<compile_context>
chip_gen: v7x
topology: tpu7x:2x2x1
jax: 0.10.0
libtpu: 0.0.40
codegen_flags: <defaults>
</compile_context>

<pallas_src>
import functools

import jax
import jax.numpy as jnp
import numpy as np
from jax.experimental import pallas as pl
from jax.experimental.pallas import tpu as pltpu


def rnn_kernel(x_ref,      # (S*BP, D)   input sequence, batch padded to BP=8, time-flattened
               w_ref,      # (R, WCOLS)  packed weight/bias slab
               out_ref,    # (1, OUT_PAD) lane-dense log-prob output (first n_out valid)
               *, seq_len, batch_pad, out_row, hidden, in_dim, n_out, out_pad, offs):
    S, BP, H, D = seq_len, batch_pad, hidden, in_dim
    H4 = 4 * H
    r_wih0, r_whh0, r_wih1, r_whh1, r_wlin, r_b0, r_b1, r_blin = offs

    # Static row-slices of the packed slab (all row offsets are multiples of 8).
    wih0 = w_ref[r_wih0:r_wih0 + D, :][:, :H4]     # (D, 4H)
    whh0 = w_ref[r_whh0:r_whh0 + H, :][:, :H4]     # (H, 4H)
    wih1 = w_ref[r_wih1:r_wih1 + H, :][:, :H4]     # (H, 4H)
    whh1 = w_ref[r_whh1:r_whh1 + H, :][:, :H4]     # (H, 4H)
    wlin = w_ref[r_wlin:r_wlin + H, :][:, :out_pad]  # (H, 128)
    b0 = w_ref[r_b0:r_b0 + 1, :][:, :H4]           # (1, 4H)  (b_ih0 + b_hh0)
    b1 = w_ref[r_b1:r_b1 + 1, :][:, :H4]           # (1, 4H)  (b_ih1 + b_hh1)
    blin = w_ref[r_blin:r_blin + 1, :][:, :out_pad]  # (1, 128)

    # ---- Hoisted layer-0 input projection: one (S*BP, D) @ (D, 4H) matmul off the
    # recurrence, bias folded in.
    xproj = (jnp.dot(x_ref[...], wih0, preferred_element_type=jnp.float32)
             + b0)                                            # (S*BP, 4H)

    # ---- Hoisted gate-activation masks.
    # sigmoid(x) = 0.5*tanh(0.5*x) + 0.5  ->  one tanh covers all four gates.
    col = jax.lax.broadcasted_iota(jnp.int32, (BP, H4), 1)
    is_g = (col >= 2 * H) & (col < 3 * H)
    pre_scale = jnp.where(is_g, 1.0, 0.5).astype(jnp.float32)

    def gate_act(gates):
        t = jnp.tanh(gates * pre_scale)                       # single EUP push per vreg
        act = jnp.where(is_g, t, 0.5 * t + 0.5)               # VPU (idle slots)
        return (act[:, 0:H], act[:, H:2 * H],
                act[:, 2 * H:3 * H], act[:, 3 * H:4 * H])     # i, f, g, o

    h1 = jnp.zeros((BP, H), jnp.float32)
    c1 = jnp.zeros((BP, H), jnp.float32)
    h2 = jnp.zeros((BP, H), jnp.float32)
    c2 = jnp.zeros((BP, H), jnp.float32)

    # Statically-unrolled time loop (S small and known at trace time).
    # Layer-0 of step t depends only on h1_{t-1}; layer-1 of step t depends on
    # h1_t and h2_{t-1}, so the scheduler can run layer-0 of t+1 under layer-1 of t.
    for t in range(S):
        # Layer 0
        rec0 = jnp.dot(h1, whh0, preferred_element_type=jnp.float32)      # (BP, 4H)
        gates0 = xproj[t * BP:(t + 1) * BP, :] + rec0
        i0, f0, g0, o0 = gate_act(gates0)
        c1 = f0 * c1 + i0 * g0
        h1 = o0 * jnp.tanh(c1)

        # Layer 1 (recurrent part uses h2_{t-1}; input part uses h1_t)
        rec1 = jnp.dot(h2, whh1, preferred_element_type=jnp.float32)      # (BP, 4H)
        gates1 = (jnp.dot(h1, wih1, preferred_element_type=jnp.float32)
                  + rec1 + b1)
        i1, f1, g1, o1 = gate_act(gates1)
        c2 = f1 * c2 + i1 * g1
        h2 = o1 * jnp.tanh(c2)

    # Final head: last (real) batch element of the last-layer hidden at the last step.
    v = h2[out_row:out_row + 1, :]                                        # (1, H)
    logits = (jnp.dot(v, wlin, preferred_element_type=jnp.float32)
              + blin)                                                     # (1, 128)
    lane = jax.lax.broadcasted_iota(jnp.int32, logits.shape, 1)
    logits = jnp.where(lane < n_out, logits, -jnp.inf)                    # mask pad lanes
    m = jnp.max(logits, axis=1, keepdims=True)
    lse = m + jnp.log(jnp.sum(jnp.exp(logits - m), axis=1, keepdims=True))
    out_ref[...] = logits - lse


def rnn_forward(inputs, params):
    """inputs: (seq_len, batch, input_dim) float32. Returns (5,) log-probs."""
    S, B, D = inputs.shape
    H = params["whh0"].shape[1]          # whh0: (4H, H)
    H4 = 4 * H
    BP = 8                               # batch padded to one sublane tile
    OUT_PAD = 128
    N_OUT = params["wlin"].shape[0]      # 5

    # Pad batch so per-step slices are sublane-aligned (padded rows never read back).
    x_pad = jnp.zeros((S, BP, D), jnp.float32).at[:, :B, :].set(
        inputs.astype(jnp.float32))
    x2d = x_pad.reshape(S * BP, D)

    # ---- Pack all weights/biases into one contiguous slab (single DMA).
    def rup8(n):
        return -(-n // 8) * 8

    WCOLS = max(H4, OUT_PAD)
    r_wih0 = 0
    r_whh0 = r_wih0 + rup8(D)
    r_wih1 = r_whh0 + rup8(H)
    r_whh1 = r_wih1 + rup8(H)
    r_wlin = r_whh1 + rup8(H)
    r_b0 = r_wlin + rup8(H)
    r_b1 = r_b0 + 8
    r_blin = r_b1 + 8
    total_rows = r_blin + 8

    slab = jnp.zeros((total_rows, WCOLS), jnp.float32)
    slab = slab.at[r_wih0:r_wih0 + D, :H4].set(params["wih0"].T)
    slab = slab.at[r_whh0:r_whh0 + H, :H4].set(params["whh0"].T)
    slab = slab.at[r_wih1:r_wih1 + H, :H4].set(params["wih1"].T)
    slab = slab.at[r_whh1:r_whh1 + H, :H4].set(params["whh1"].T)
    slab = slab.at[r_wlin:r_wlin + H, :N_OUT].set(params["wlin"].T)
    slab = slab.at[r_b0, :H4].set(params["bih0"] + params["bhh0"])
    slab = slab.at[r_b1, :H4].set(params["bih1"] + params["bhh1"])
    slab = slab.at[r_blin, :N_OUT].set(params["blin"])

    kernel = functools.partial(
        rnn_kernel, seq_len=S, batch_pad=BP, out_row=B - 1, hidden=H,
        in_dim=D, n_out=N_OUT, out_pad=OUT_PAD,
        offs=(r_wih0, r_whh0, r_wih1, r_whh1, r_wlin, r_b0, r_b1, r_blin))
    vmem = pl.BlockSpec(memory_space=pltpu.MemorySpace.VMEM)

    out = pl.pallas_call(
        kernel,
        out_shape=jax.ShapeDtypeStruct((1, OUT_PAD), jnp.float32),
        in_specs=[vmem, vmem],
        out_specs=vmem,
    )(x2d, slab)
    return out[0, :N_OUT]


def rnn_reference(inputs, params):
    """Pure-JAX reference of the PyTorch module's forward."""
    S, B, D = inputs.shape
    H = params["whh0"].shape[1]

    def cell(x, h, c, wih, whh, b):
        gates = x @ wih.T + h @ whh.T + b
        i = jax.nn.sigmoid(gates[:, 0 * H:1 * H])
        f = jax.nn.sigmoid(gates[:, 1 * H:2 * H])
        g = jnp.tanh(gates[:, 2 * H:3 * H])
        o = jax.nn.sigmoid(gates[:, 3 * H:4 * H])
        c = f * c + i * g
        h = o * jnp.tanh(c)
        return h, c

    h1 = c1 = h2 = c2 = jnp.zeros((B, H), jnp.float32)
    b0 = params["bih0"] + params["bhh0"]
    b1 = params["bih1"] + params["bhh1"]
    for t in range(S):
        h1, c1 = cell(inputs[t], h1, c1, params["wih0"], params["whh0"], b0)
        h2, c2 = cell(h1, h2, c2, params["wih1"], params["whh1"], b1)
    v = h2[B - 1]                                     # output[:, -1, :][-1]
    logits = params["wlin"] @ v + params["blin"]      # (5,)
    return jax.nn.log_softmax(logits, axis=0)


def init_params(key, input_dim, h):
    """Deterministic init matching the PyTorch module's parameter shapes."""
    ks = jax.random.split(key, 10)
    k_lstm = 1.0 / np.sqrt(h)
    k_lin = 1.0 / np.sqrt(h)
    u = lambda k, shape, s: jax.random.uniform(k, shape, jnp.float32, -s, s)
    return {
        "wih0": u(ks[0], (4 * h, input_dim), k_lstm),
        "whh0": u(ks[1], (4 * h, h), k_lstm),
        "bih0": u(ks[2], (4 * h,), k_lstm),
        "bhh0": u(ks[3], (4 * h,), k_lstm),
        "wih1": u(ks[4], (4 * h, h), k_lstm),
        "whh1": u(ks[5], (4 * h, h), k_lstm),
        "bih1": u(ks[6], (4 * h,), k_lstm),
        "bhh1": u(ks[7], (4 * h,), k_lstm),
        "wlin": u(ks[8], (5, h), k_lin),
        "blin": u(ks[9], (5,), k_lin),
    }


if __name__ == "__main__":
    SEQ, BATCH, INPUT_DIM, HIDDEN = 8, 2, 16, 32

    key = jax.random.PRNGKey(0)
    k_params, k_x = jax.random.split(key)
    params = init_params(k_params, INPUT_DIM, HIDDEN)
    x = jax.random.normal(k_x, (SEQ, BATCH, INPUT_DIM), jnp.float32)

    out = jax.block_until_ready(rnn_forward(x, params))
    ref = jax.block_until_ready(rnn_reference(x, params))

    np.testing.assert_allclose(np.asarray(out), np.asarray(ref),
                               rtol=1e-4, atol=1e-4)
    assert out.shape == (5,)
    print("KERNEL_OK")
</pallas_src>

<mosaic_0001>
module attributes {stable_mosaic.version = 11 : i64} {
  func.func @rnn_kernel(%arg0: memref<64x16xf32, #tpu.memory_space<vmem>>, %arg1: memref<168x128xf32, #tpu.memory_space<vmem>>, %arg2: memref<1x128xf32, #tpu.memory_space<vmem>>) attributes {dimension_semantics = [], scalar_prefetch = 0 : i64, scratch_operands = 0 : i64, tpu.core_type = #tpu.core_type<tc>} {
    %c0 = arith.constant 0 : index
    %c0_0 = arith.constant 0 : index
    %0 = vector.load %arg1[%c0, %c0_0] : memref<168x128xf32, #tpu.memory_space<vmem>>, vector<16x128xf32>
    %c16 = arith.constant 16 : index
    %c0_1 = arith.constant 0 : index
    %1 = vector.load %arg1[%c16, %c0_1] : memref<168x128xf32, #tpu.memory_space<vmem>>, vector<32x128xf32>
    %c48 = arith.constant 48 : index
    %c0_2 = arith.constant 0 : index
    %2 = vector.load %arg1[%c48, %c0_2] : memref<168x128xf32, #tpu.memory_space<vmem>>, vector<32x128xf32>
    %c80 = arith.constant 80 : index
    %c0_3 = arith.constant 0 : index
    %3 = vector.load %arg1[%c80, %c0_3] : memref<168x128xf32, #tpu.memory_space<vmem>>, vector<32x128xf32>
    %c112 = arith.constant 112 : index
    %c0_4 = arith.constant 0 : index
    %4 = vector.load %arg1[%c112, %c0_4] : memref<168x128xf32, #tpu.memory_space<vmem>>, vector<32x128xf32>
    %c144 = arith.constant 144 : index
    %c0_5 = arith.constant 0 : index
    %5 = vector.load %arg1[%c144, %c0_5] : memref<168x128xf32, #tpu.memory_space<vmem>>, vector<1x128xf32>
    %c152 = arith.constant 152 : index
    %c0_6 = arith.constant 0 : index
    %6 = vector.load %arg1[%c152, %c0_6] : memref<168x128xf32, #tpu.memory_space<vmem>>, vector<1x128xf32>
    %c160 = arith.constant 160 : index
    %c0_7 = arith.constant 0 : index
    %7 = vector.load %arg1[%c160, %c0_7] : memref<168x128xf32, #tpu.memory_space<vmem>>, vector<1x128xf32>
    %c0_8 = arith.constant 0 : index
    %c0_9 = arith.constant 0 : index
    %8 = vector.load %arg0[%c0_8, %c0_9] : memref<64x16xf32, #tpu.memory_space<vmem>>, vector<64x16xf32>
    %cst = arith.constant dense<0.000000e+00> : vector<64x128xf32>
    %9 = tpu.matmul %8, %0, %cst {dimension_numbers = #tpu.dot_dimension_numbers<[1], [0], [0], [1], [0, 0, 1, 1], [], []>} : vector<64x16xf32>, vector<16x128xf32>, vector<64x128xf32> -> vector<64x128xf32>
    %10 = vector.broadcast %5 : vector<1x128xf32> to vector<64x128xf32>
    %11 = arith.addf %9, %10 : vector<64x128xf32>
    %12 = tpu.iota {dimensions = array<i32: 1>} : vector<8x128xi32>
    %c64_i32 = arith.constant 64 : i32
    %13 = vector.broadcast %c64_i32 : i32 to vector<8x128xi32>
    %14 = arith.cmpi sge, %12, %13 : vector<8x128xi32>
    %c96_i32 = arith.constant 96 : i32
    %15 = vector.broadcast %c96_i32 : i32 to vector<8x128xi32>
    %16 = arith.cmpi slt, %12, %15 : vector<8x128xi32>
    %17 = arith.andi %14, %16 : vector<8x128xi1>
    %cst_10 = arith.constant 1.000000e+00 : f32
    %cst_11 = arith.constant 5.000000e-01 : f32
    %18 = vector.broadcast %cst_10 : f32 to vector<8x128xf32>
    %19 = vector.broadcast %cst_11 : f32 to vector<8x128xf32>
    %20 = arith.select %17, %18, %19 : vector<8x128xi1>, vector<8x128xf32>
    %cst_12 = arith.constant 0.000000e+00 : f32
    %21 = vector.broadcast %cst_12 : f32 to vector<8x32xf32>
    %cst_13 = arith.constant 0.000000e+00 : f32
    %22 = vector.broadcast %cst_13 : f32 to vector<8x32xf32>
    %cst_14 = arith.constant 0.000000e+00 : f32
    %23 = vector.broadcast %cst_14 : f32 to vector<8x32xf32>
    %cst_15 = arith.constant 0.000000e+00 : f32
    %24 = vector.broadcast %cst_15 : f32 to vector<8x32xf32>
    %cst_16 = arith.constant dense<0.000000e+00> : vector<8x128xf32>
    %25 = tpu.matmul %21, %1, %cst_16 {dimension_numbers = #tpu.dot_dimension_numbers<[1], [0], [0], [1], [0, 0, 1, 1], [], []>} : vector<8x32xf32>, vector<32x128xf32>, vector<8x128xf32> -> vector<8x128xf32>
    %26 = vector.extract_strided_slice %11 {offsets = [0, 0], sizes = [8, 128], strides = [1, 1]} : vector<64x128xf32> to vector<8x128xf32>
    %27 = arith.addf %26, %25 : vector<8x128xf32>
    %28 = arith.mulf %27, %20 : vector<8x128xf32>
    %29 = math.tanh %28 : vector<8x128xf32>
    %cst_17 = arith.constant 5.000000e-01 : f32
    %30 = vector.broadcast %cst_17 : f32 to vector<8x128xf32>
    %31 = arith.mulf %30, %29 : vector<8x128xf32>
    %cst_18 = arith.constant 5.000000e-01 : f32
    %32 = vector.broadcast %cst_18 : f32 to vector<8x128xf32>
    %33 = arith.addf %31, %32 : vector<8x128xf32>
    %34 = arith.select %17, %29, %33 : vector<8x128xi1>, vector<8x128xf32>
    %35 = vector.extract_strided_slice %34 {offsets = [0, 0], sizes = [8, 32], strides = [1, 1]} : vector<8x128xf32> to vector<8x32xf32>
    %36 = vector.extract_strided_slice %34 {offsets = [0, 32], sizes = [8, 32], strides = [1, 1]} : vector<8x128xf32> to vector<8x32xf32>
    %37 = vector.extract_strided_slice %34 {offsets = [0, 64], sizes = [8, 32], strides = [1, 1]} : vector<8x128xf32> to vector<8x32xf32>
    %38 = vector.extract_strided_slice %34 {offsets = [0, 96], sizes = [8, 32], strides = [1, 1]} : vector<8x128xf32> to vector<8x32xf32>
    %39 = arith.mulf %36, %22 : vector<8x32xf32>
    %40 = arith.mulf %35, %37 : vector<8x32xf32>
    %41 = arith.addf %39, %40 : vector<8x32xf32>
    %42 = math.tanh %41 : vector<8x32xf32>
    %43 = arith.mulf %38, %42 : vector<8x32xf32>
    %cst_19 = arith.constant dense<0.000000e+00> : vector<8x128xf32>
    %44 = tpu.matmul %23, %3, %cst_19 {dimension_numbers = #tpu.dot_dimension_numbers<[1], [0], [0], [1], [0, 0, 1, 1], [], []>} : vector<8x32xf32>, vector<32x128xf32>, vector<8x128xf32> -> vector<8x128xf32>
    %cst_20 = arith.constant dense<0.000000e+00> : vector<8x128xf32>
    %45 = tpu.matmul %43, %2, %cst_20 {dimension_numbers = #tpu.dot_dimension_numbers<[1], [0], [0], [1], [0, 0, 1, 1], [], []>} : vector<8x32xf32>, vector<32x128xf32>, vector<8x128xf32> -> vector<8x128xf32>
    %46 = arith.addf %45, %44 : vector<8x128xf32>
    %47 = vector.broadcast %6 : vector<1x128xf32> to vector<8x128xf32>
    %48 = arith.addf %46, %47 : vector<8x128xf32>
    %49 = arith.mulf %48, %20 : vector<8x128xf32>
    %50 = math.tanh %49 : vector<8x128xf32>
    %cst_21 = arith.constant 5.000000e-01 : f32
    %51 = vector.broadcast %cst_21 : f32 to vector<8x128xf32>
    %52 = arith.mulf %51, %50 : vector<8x128xf32>
    %cst_22 = arith.constant 5.000000e-01 : f32
    %53 = vector.broadcast %cst_22 : f32 to vector<8x128xf32>
    %54 = arith.addf %52, %53 : vector<8x128xf32>
    %55 = arith.select %17, %50, %54 : vector<8x128xi1>, vector<8x128xf32>
    %56 = vector.extract_strided_slice %55 {offsets = [0, 0], sizes = [8, 32], strides = [1, 1]} : vector<8x128xf32> to vector<8x32xf32>
    %57 = vector.extract_strided_slice %55 {offsets = [0, 32], sizes = [8, 32], strides = [1, 1]} : vector<8x128xf32> to vector<8x32xf32>
    %58 = vector.extract_strided_slice %55 {offsets = [0, 64], sizes = [8, 32], strides = [1, 1]} : vector<8x128xf32> to vector<8x32xf32>
    %59 = vector.extract_strided_slice %55 {offsets = [0, 96], sizes = [8, 32], strides = [1, 1]} : vector<8x128xf32> to vector<8x32xf32>
    %60 = arith.mulf %57, %24 : vector<8x32xf32>
    %61 = arith.mulf %56, %58 : vector<8x32xf32>
    %62 = arith.addf %60, %61 : vector<8x32xf32>
    %63 = math.tanh %62 : vector<8x32xf32>
    %64 = arith.mulf %59, %63 : vector<8x32xf32>
    %cst_23 = arith.constant dense<0.000000e+00> : vector<8x128xf32>
    %65 = tpu.matmul %43, %1, %cst_23 {dimension_numbers = #tpu.dot_dimension_numbers<[1], [0], [0], [1], [0, 0, 1, 1], [], []>} : vector<8x32xf32>, vector<32x128xf32>, vector<8x128xf32> -> vector<8x128xf32>
    %66 = vector.extract_strided_slice %11 {offsets = [8, 0], sizes = [8, 128], strides = [1, 1]} : vector<64x128xf32> to vector<8x128xf32>
    %67 = arith.addf %66, %65 : vector<8x128xf32>
    %68 = arith.mulf %67, %20 : vector<8x128xf32>
    %69 = math.tanh %68 : vector<8x128xf32>
    %cst_24 = arith.constant 5.000000e-01 : f32
    %70 = vector.broadcast %cst_24 : f32 to vector<8x128xf32>
    %71 = arith.mulf %70, %69 : vector<8x128xf32>
    %cst_25 = arith.constant 5.000000e-01 : f32
    %72 = vector.broadcast %cst_25 : f32 to vector<8x128xf32>
    %73 = arith.addf %71, %72 : vector<8x128xf32>
    %74 = arith.select %17, %69, %73 : vector<8x128xi1>, vector<8x128xf32>
    %75 = vector.extract_strided_slice %74 {offsets = [0, 0], sizes = [8, 32], strides = [1, 1]} : vector<8x128xf32> to vector<8x32xf32>
    %76 = vector.extract_strided_slice %74 {offsets = [0, 32], sizes = [8, 32], strides = [1, 1]} : vector<8x128xf32> to vector<8x32xf32>
    %77 = vector.extract_strided_slice %74 {offsets = [0, 64], sizes = [8, 32], strides = [1, 1]} : vector<8x128xf32> to vector<8x32xf32>
    %78 = vector.extract_strided_slice %74 {offsets = [0, 96], sizes = [8, 32], strides = [1, 1]} : vector<8x128xf32> to vector<8x32xf32>
    %79 = arith.mulf %76, %41 : vector<8x32xf32>
    %80 = arith.mulf %75, %77 : vector<8x32xf32>
    %81 = arith.addf %79, %80 : vector<8x32xf32>
    %82 = math.tanh %81 : vector<8x32xf32>
    %83 = arith.mulf %78, %82 : vector<8x32xf32>
    %cst_26 = arith.constant dense<0.000000e+00> : vector<8x128xf32>
    %84 = tpu.matmul %64, %3, %cst_26 {dimension_numbers = #tpu.dot_dimension_numbers<[1], [0], [0], [1], [0, 0, 1, 1], [], []>} : vector<8x32xf32>, vector<32x128xf32>, vector<8x128xf32> -> vector<8x128xf32>
    %cst_27 = arith.constant dense<0.000000e+00> : vector<8x128xf32>
    %85 = tpu.matmul %83, %2, %cst_27 {dimension_numbers = #tpu.dot_dimension_numbers<[1], [0], [0], [1], [0, 0, 1, 1], [], []>} : vector<8x32xf32>, vector<32x128xf32>, vector<8x128xf32> -> vector<8x128xf32>
    %86 = arith.addf %85, %84 : vector<8x128xf32>
    %87 = vector.broadcast %6 : vector<1x128xf32> to vector<8x128xf32>
    %88 = arith.addf %86, %87 : vector<8x128xf32>
    %89 = arith.mulf %88, %20 : vector<8x128xf32>
    %90 = math.tanh %89 : vector<8x128xf32>
    %cst_28 = arith.constant 5.000000e-01 : f32
    %91 = vector.broadcast %cst_28 : f32 to vector<8x128xf32>
    %92 = arith.mulf %91, %90 : vector<8x128xf32>
    %cst_29 = arith.constant 5.000000e-01 : f32
    %93 = vector.broadcast %cst_29 : f32 to vector<8x128xf32>
    %94 = arith.addf %92, %93 : vector<8x128xf32>
    %95 = arith.select %17, %90, %94 : vector<8x128xi1>, vector<8x128xf32>
    %96 = vector.extract_strided_slice %95 {offsets = [0, 0], sizes = [8, 32], strides = [1, 1]} : vector<8x128xf32> to vector<8x32xf32>
    %97 = vector.extract_strided_slice %95 {offsets = [0, 32], sizes = [8, 32], strides = [1, 1]} : vector<8x128xf32> to vector<8x32xf32>
    %98 = vector.extract_strided_slice %95 {offsets = [0, 64], sizes = [8, 32], strides = [1, 1]} : vector<8x128xf32> to vector<8x32xf32>
    %99 = vector.extract_strided_slice %95 {offsets = [0, 96], sizes = [8, 32], strides = [1, 1]} : vector<8x128xf32> to vector<8x32xf32>
    %100 = arith.mulf %97, %62 : vector<8x32xf32>
    %101 = arith.mulf %96, %98 : vector<8x32xf32>
    %102 = arith.addf %100, %101 : vector<8x32xf32>
    %103 = math.tanh %102 : vector<8x32xf32>
    %104 = arith.mulf %99, %103 : vector<8x32xf32>
    %cst_30 = arith.constant dense<0.000000e+00> : vector<8x128xf32>
    %105 = tpu.matmul %83, %1, %cst_30 {dimension_numbers = #tpu.dot_dimension_numbers<[1], [0], [0], [1], [0, 0, 1, 1], [], []>} : vector<8x32xf32>, vector<32x128xf32>, vector<8x128xf32> -> vector<8x128xf32>
    %106 = vector.extract_strided_slice %11 {offsets = [16, 0], sizes = [8, 128], strides = [1, 1]} : vector<64x128xf32> to vector<8x128xf32>
    %107 = arith.addf %106, %105 : vector<8x128xf32>
    %108 = arith.mulf %107, %20 : vector<8x128xf32>
    %109 = math.tanh %108 : vector<8x128xf32>
    %cst_31 = arith.constant 5.000000e-01 : f32
    %110 = vector.broadcast %cst_31 : f32 to vector<8x128xf32>
    %111 = arith.mulf %110, %109 : vector<8x128xf32>
    %cst_32 = arith.constant 5.000000e-01 : f32
    %112 = vector.broadcast %cst_32 : f32 to vector<8x128xf32>
    %113 = arith.addf %111, %112 : vector<8x128xf32>
    %114 = arith.select %17, %109, %113 : vector<8x128xi1>, vector<8x128xf32>
    %115 = vector.extract_strided_slice %114 {offsets = [0, 0], sizes = [8, 32], strides = [1, 1]} : vector<8x128xf32> to vector<8x32xf32>
    %116 = vector.extract_strided_slice %114 {offsets = [0, 32], sizes = [8, 32], strides = [1, 1]} : vector<8x128xf32> to vector<8x32xf32>
    %117 = vector.extract_strided_slice %114 {offsets = [0, 64], sizes = [8, 32], strides = [1, 1]} : vector<8x128xf32> to vector<8x32xf32>
    %118 = vector.extract_strided_slice %114 {offsets = [0, 96], sizes = [8, 32], strides = [1, 1]} : vector<8x128xf32> to vector<8x32xf32>
    %119 = arith.mulf %116, %81 : vector<8x32xf32>
    %120 = arith.mulf %115, %117 : vector<8x32xf32>
    %121 = arith.addf %119, %120 : vector<8x32xf32>
    %122 = math.tanh %121 : vector<8x32xf32>
    %123 = arith.mulf %118, %122 : vector<8x32xf32>
    %cst_33 = arith.constant dense<0.000000e+00> : vector<8x128xf32>
    %124 = tpu.matmul %104, %3, %cst_33 {dimension_numbers = #tpu.dot_dimension_numbers<[1], [0], [0], [1], [0, 0, 1, 1], [], []>} : vector<8x32xf32>, vector<32x128xf32>, vector<8x128xf32> -> vector<8x128xf32>
    %cst_34 = arith.constant dense<0.000000e+00> : vector<8x128xf32>
    %125 = tpu.matmul %123, %2, %cst_34 {dimension_numbers = #tpu.dot_dimension_numbers<[1], [0], [0], [1], [0, 0, 1, 1], [], []>} : vector<8x32xf32>, vector<32x128xf32>, vector<8x128xf32> -> vector<8x128xf32>
    %126 = arith.addf %125, %124 : vector<8x128xf32>
    %127 = vector.broadcast %6 : vector<1x128xf32> to vector<8x128xf32>
    %128 = arith.addf %126, %127 : vector<8x128xf32>
    %129 = arith.mulf %128, %20 : vector<8x128xf32>
    %130 = math.tanh %129 : vector<8x128xf32>
    %cst_35 = arith.constant 5.000000e-01 : f32
    %131 = vector.broadcast %cst_35 : f32 to vector<8x128xf32>
    %132 = arith.mulf %131, %130 : vector<8x128xf32>
    %cst_36 = arith.constant 5.000000e-01 : f32
    %133 = vector.broadcast %cst_36 : f32 to vector<8x128xf32>
    %134 = arith.addf %132, %133 : vector<8x128xf32>
    %135 = arith.select %17, %130, %134 : vector<8x128xi1>, vector<8x128xf32>
    %136 = vector.extract_strided_slice %135 {offsets = [0, 0], sizes = [8, 32], strides = [1, 1]} : vector<8x128xf32> to vector<8x32xf32>
    %137 = vector.extract_strided_slice %135 {offsets = [0, 32], sizes = [8, 32], strides = [1, 1]} : vector<8x128xf32> to vector<8x32xf32>
    %138 = vector.extract_strided_slice %135 {offsets = [0, 64], sizes = [8, 32], strides = [1, 1]} : vector<8x128xf32> to vector<8x32xf32>
    %139 = vector.extract_strided_slice %135 {offsets = [0, 96], sizes = [8, 32], strides = [1, 1]} : vector<8x128xf32> to vector<8x32xf32>
    %140 = arith.mulf %137, %102 : vector<8x32xf32>
    %141 = arith.mulf %136, %138 : vector<8x32xf32>
    %142 = arith.addf %140, %141 : vector<8x32xf32>
    %143 = math.tanh %142 : vector<8x32xf32>
    %144 = arith.mulf %139, %143 : vector<8x32xf32>
    %cst_37 = arith.constant dense<0.000000e+00> : vector<8x128xf32>
    %145 = tpu.matmul %123, %1, %cst_37 {dimension_numbers = #tpu.dot_dimension_numbers<[1], [0], [0], [1], [0, 0, 1, 1], [], []>} : vector<8x32xf32>, vector<32x128xf32>, vector<8x128xf32> -> vector<8x128xf32>
    %146 = vector.extract_strided_slice %11 {offsets = [24, 0], sizes = [8, 128], strides = [1, 1]} : vector<64x128xf32> to vector<8x128xf32>
    %147 = arith.addf %146, %145 : vector<8x128xf32>
    %148 = arith.mulf %147, %20 : vector<8x128xf32>
    %149 = math.tanh %148 : vector<8x128xf32>
    %cst_38 = arith.constant 5.000000e-01 : f32
    %150 = vector.broadcast %cst_38 : f32 to vector<8x128xf32>
    %151 = arith.mulf %150, %149 : vector<8x128xf32>
    %cst_39 = arith.constant 5.000000e-01 : f32
    %152 = vector.broadcast %cst_39 : f32 to vector<8x128xf32>
    %153 = arith.addf %151, %152 : vector<8x128xf32>
    %154 = arith.select %17, %149, %153 : vector<8x128xi1>, vector<8x128xf32>
    %155 = vector.extract_strided_slice %154 {offsets = [0, 0], sizes = [8, 32], strides = [1, 1]} : vector<8x128xf32> to vector<8x32xf32>
    %156 = vector.extract_strided_slice %154 {offsets = [0, 32], sizes = [8, 32], strides = [1, 1]} : vector<8x128xf32> to vector<8x32xf32>
    %157 = vector.extract_strided_slice %154 {offsets = [0, 64], sizes = [8, 32], strides = [1, 1]} : vector<8x128xf32> to vector<8x32xf32>
    %158 = vector.extract_strided_slice %154 {offsets = [0, 96], sizes = [8, 32], strides = [1, 1]} : vector<8x128xf32> to vector<8x32xf32>
    %159 = arith.mulf %156, %121 : vector<8x32xf32>
    %160 = arith.mulf %155, %157 : vector<8x32xf32>
    %161 = arith.addf %159, %160 : vector<8x32xf32>
    %162 = math.tanh %161 : vector<8x32xf32>
    %163 = arith.mulf %158, %162 : vector<8x32xf32>
    %cst_40 = arith.constant dense<0.000000e+00> : vector<8x128xf32>
    %164 = tpu.matmul %144, %3, %cst_40 {dimension_numbers = #tpu.dot_dimension_numbers<[1], [0], [0], [1], [0, 0, 1, 1], [], []>} : vector<8x32xf32>, vector<32x128xf32>, vector<8x128xf32> -> vector<8x128xf32>
    %cst_41 = arith.constant dense<0.000000e+00> : vector<8x128xf32>
    %165 = tpu.matmul %163, %2, %cst_41 {dimension_numbers = #tpu.dot_dimension_numbers<[1], [0], [0], [1], [0, 0, 1, 1], [], []>} : vector<8x32xf32>, vector<32x128xf32>, vector<8x128xf32> -> vector<8x128xf32>
    %166 = arith.addf %165, %164 : vector<8x128xf32>
    %167 = vector.broadcast %6 : vector<1x128xf32> to vector<8x128xf32>
    %168 = arith.addf %166, %167 : vector<8x128xf32>
    %169 = arith.mulf %168, %20 : vector<8x128xf32>
    %170 = math.tanh %169 : vector<8x128xf32>
    %cst_42 = arith.constant 5.000000e-01 : f32
    %171 = vector.broadcast %cst_42 : f32 to vector<8x128xf32>
    %172 = arith.mulf %171, %170 : vector<8x128xf32>
    %cst_43 = arith.constant 5.000000e-01 : f32
    %173 = vector.broadcast %cst_43 : f32 to vector<8x128xf32>
    %174 = arith.addf %172, %173 : vector<8x128xf32>
    %175 = arith.select %17, %170, %174 : vector<8x128xi1>, vector<8x128xf32>
    %176 = vector.extract_strided_slice %175 {offsets = [0, 0], sizes = [8, 32], strides = [1, 1]} : vector<8x128xf32> to vector<8x32xf32>
    %177 = vector.extract_strided_slice %175 {offsets = [0, 32], sizes = [8, 32], strides = [1, 1]} : vector<8x128xf32> to vector<8x32xf32>
    %178 = vector.extract_strided_slice %175 {offsets = [0, 64], sizes = [8, 32], strides = [1, 1]} : vector<8x128xf32> to vector<8x32xf32>
    %179 = vector.extract_strided_slice %175 {offsets = [0, 96], sizes = [8, 32], strides = [1, 1]} : vector<8x128xf32> to vector<8x32xf32>
    %180 = arith.mulf %177, %142 : vector<8x32xf32>
    %181 = arith.mulf %176, %178 : vector<8x32xf32>
    %182 = arith.addf %180, %181 : vector<8x32xf32>
    %183 = math.tanh %182 : vector<8x32xf32>
    %184 = arith.mulf %179, %183 : vector<8x32xf32>
    %cst_44 = arith.constant dense<0.000000e+00> : vector<8x128xf32>
    %185 = tpu.matmul %163, %1, %cst_44 {dimension_numbers = #tpu.dot_dimension_numbers<[1], [0], [0], [1], [0, 0, 1, 1], [], []>} : vector<8x32xf32>, vector<32x128xf32>, vector<8x128xf32> -> vector<8x128xf32>
    %186 = vector.extract_strided_slice %11 {offsets = [32, 0], sizes = [8, 128], strides = [1, 1]} : vector<64x128xf32> to vector<8x128xf32>
    %187 = arith.addf %186, %185 : vector<8x128xf32>
    %188 = arith.mulf %187, %20 : vector<8x128xf32>
    %189 = math.tanh %188 : vector<8x128xf32>
    %cst_45 = arith.constant 5.000000e-01 : f32
    %190 = vector.broadcast %cst_45 : f32 to vector<8x128xf32>
    %191 = arith.mulf %190, %189 : vector<8x128xf32>
    %cst_46 = arith.constant 5.000000e-01 : f32
    %192 = vector.broadcast %cst_46 : f32 to vector<8x128xf32>
    %193 = arith.addf %191, %192 : vector<8x128xf32>
    %194 = arith.select %17, %189, %193 : vector<8x128xi1>, vector<8x128xf32>
    %195 = vector.extract_strided_slice %194 {offsets = [0, 0], sizes = [8, 32], strides = [1, 1]} : vector<8x128xf32> to vector<8x32xf32>
    %196 = vector.extract_strided_slice %194 {offsets = [0, 32], sizes = [8, 32], strides = [1, 1]} : vector<8x128xf32> to vector<8x32xf32>
    %197 = vector.extract_strided_slice %194 {offsets = [0, 64], sizes = [8, 32], strides = [1, 1]} : vector<8x128xf32> to vector<8x32xf32>
    %198 = vector.extract_strided_slice %194 {offsets = [0, 96], sizes = [8, 32], strides = [1, 1]} : vector<8x128xf32> to vector<8x32xf32>
    %199 = arith.mulf %196, %161 : vector<8x32xf32>
    %200 = arith.mulf %195, %197 : vector<8x32xf32>
    %201 = arith.addf %199, %200 : vector<8x32xf32>
    %202 = math.tanh %201 : vector<8x32xf32>
    %203 = arith.mulf %198, %202 : vector<8x32xf32>
    %cst_47 = arith.constant dense<0.000000e+00> : vector<8x128xf32>
    %204 = tpu.matmul %184, %3, %cst_47 {dimension_numbers = #tpu.dot_dimension_numbers<[1], [0], [0], [1], [0, 0, 1, 1], [], []>} : vector<8x32xf32>, vector<32x128xf32>, vector<8x128xf32> -> vector<8x128xf32>
    %cst_48 = arith.constant dense<0.000000e+00> : vector<8x128xf32>
    %205 = tpu.matmul %203, %2, %cst_48 {dimension_numbers = #tpu.dot_dimension_numbers<[1], [0], [0], [1], [0, 0, 1, 1], [], []>} : vector<8x32xf32>, vector<32x128xf32>, vector<8x128xf32> -> vector<8x128xf32>
    %206 = arith.addf %205, %204 : vector<8x128xf32>
    %207 = vector.broadcast %6 : vector<1x128xf32> to vector<8x128xf32>
    %208 = arith.addf %206, %207 : vector<8x128xf32>
    %209 = arith.mulf %208, %20 : vector<8x128xf32>
    %210 = math.tanh %209 : vector<8x128xf32>
    %cst_49 = arith.constant 5.000000e-01 : f32
    %211 = vector.broadcast %cst_49 : f32 to vector<8x128xf32>
    %212 = arith.mulf %211, %210 : vector<8x128xf32>
    %cst_50 = arith.constant 5.000000e-01 : f32
    %213 = vector.broadcast %cst_50 : f32 to vector<8x128xf32>
    %214 = arith.addf %212, %213 : vector<8x128xf32>
    %215 = arith.select %17, %210, %214 : vector<8x128xi1>, vector<8x128xf32>
    %216 = vector.extract_strided_slice %215 {offsets = [0, 0], sizes = [8, 32], strides = [1, 1]} : vector<8x128xf32> to vector<8x32xf32>
    %217 = vector.extract_strided_slice %215 {offsets = [0, 32], sizes = [8, 32], strides = [1, 1]} : vector<8x128xf32> to vector<8x32xf32>
    %218 = vector.extract_strided_slice %215 {offsets = [0, 64], sizes = [8, 32], strides = [1, 1]} : vector<8x128xf32> to vector<8x32xf32>
    %219 = vector.extract_strided_slice %215 {offsets = [0, 96], sizes = [8, 32], strides = [1, 1]} : vector<8x128xf32> to vector<8x32xf32>
    %220 = arith.mulf %217, %182 : vector<8x32xf32>
    %221 = arith.mulf %216, %218 : vector<8x32xf32>
    %222 = arith.addf %220, %221 : vector<8x32xf32>
    %223 = math.tanh %222 : vector<8x32xf32>
    %224 = arith.mulf %219, %223 : vector<8x32xf32>
    %cst_51 = arith.constant dense<0.000000e+00> : vector<8x128xf32>
    %225 = tpu.matmul %203, %1, %cst_51 {dimension_numbers = #tpu.dot_dimension_numbers<[1], [0], [0], [1], [0, 0, 1, 1], [], []>} : vector<8x32xf32>, vector<32x128xf32>, vector<8x128xf32> -> vector<8x128xf32>
    %226 = vector.extract_strided_slice %11 {offsets = [40, 0], sizes = [8, 128], strides = [1, 1]} : vector<64x128xf32> to vector<8x128xf32>
    %227 = arith.addf %226, %225 : vector<8x128xf32>
    %228 = arith.mulf %227, %20 : vector<8x128xf32>
    %229 = math.tanh %228 : vector<8x128xf32>
    %cst_52 = arith.constant 5.000000e-01 : f32
    %230 = vector.broadcast %cst_52 : f32 to vector<8x128xf32>
    %231 = arith.mulf %230, %229 : vector<8x128xf32>
    %cst_53 = arith.constant 5.000000e-01 : f32
    %232 = vector.broadcast %cst_53 : f32 to vector<8x128xf32>
    %233 = arith.addf %231, %232 : vector<8x128xf32>
    %234 = arith.select %17, %229, %233 : vector<8x128xi1>, vector<8x128xf32>
    %235 = vector.extract_strided_slice %234 {offsets = [0, 0], sizes = [8, 32], strides = [1, 1]} : vector<8x128xf32> to vector<8x32xf32>
    %236 = vector.extract_strided_slice %234 {offsets = [0, 32], sizes = [8, 32], strides = [1, 1]} : vector<8x128xf32> to vector<8x32xf32>
    %237 = vector.extract_strided_slice %234 {offsets = [0, 64], sizes = [8, 32], strides = [1, 1]} : vector<8x128xf32> to vector<8x32xf32>
    %238 = vector.extract_strided_slice %234 {offsets = [0, 96], sizes = [8, 32], strides = [1, 1]} : vector<8x128xf32> to vector<8x32xf32>
    %239 = arith.mulf %236, %201 : vector<8x32xf32>
    %240 = arith.mulf %235, %237 : vector<8x32xf32>
    %241 = arith.addf %239, %240 : vector<8x32xf32>
    %242 = math.tanh %241 : vector<8x32xf32>
    %243 = arith.mulf %238, %242 : vector<8x32xf32>
    %cst_54 = arith.constant dense<0.000000e+00> : vector<8x128xf32>
    %244 = tpu.matmul %224, %3, %cst_54 {dimension_numbers = #tpu.dot_dimension_numbers<[1], [0], [0], [1], [0, 0, 1, 1], [], []>} : vector<8x32xf32>, vector<32x128xf32>, vector<8x128xf32> -> vector<8x128xf32>
    %cst_55 = arith.constant dense<0.000000e+00> : vector<8x128xf32>
    %245 = tpu.matmul %243, %2, %cst_55 {dimension_numbers = #tpu.dot_dimension_numbers<[1], [0], [0], [1], [0, 0, 1, 1], [], []>} : vector<8x32xf32>, vector<32x128xf32>, vector<8x128xf32> -> vector<8x128xf32>
    %246 = arith.addf %245, %244 : vector<8x128xf32>
    %247 = vector.broadcast %6 : vector<1x128xf32> to vector<8x128xf32>
    %248 = arith.addf %246, %247 : vector<8x128xf32>
    %249 = arith.mulf %248, %20 : vector<8x128xf32>
    %250 = math.tanh %249 : vector<8x128xf32>
    %cst_56 = arith.constant 5.000000e-01 : f32
    %251 = vector.broadcast %cst_56 : f32 to vector<8x128xf32>
    %252 = arith.mulf %251, %250 : vector<8x128xf32>
    %cst_57 = arith.constant 5.000000e-01 : f32
    %253 = vector.broadcast %cst_57 : f32 to vector<8x128xf32>
    %254 = arith.addf %252, %253 : vector<8x128xf32>
    %255 = arith.select %17, %250, %254 : vector<8x128xi1>, vector<8x128xf32>
    %256 = vector.extract_strided_slice %255 {offsets = [0, 0], sizes = [8, 32], strides = [1, 1]} : vector<8x128xf32> to vector<8x32xf32>
    %257 = vector.extract_strided_slice %255 {offsets = [0, 32], sizes = [8, 32], strides = [1, 1]} : vector<8x128xf32> to vector<8x32xf32>
    %258 = vector.extract_strided_slice %255 {offsets = [0, 64], sizes = [8, 32], strides = [1, 1]} : vector<8x128xf32> to vector<8x32xf32>
    %259 = vector.extract_strided_slice %255 {offsets = [0, 96], sizes = [8, 32], strides = [1, 1]} : vector<8x128xf32> to vector<8x32xf32>
    %260 = arith.mulf %257, %222 : vector<8x32xf32>
    %261 = arith.mulf %256, %258 : vector<8x32xf32>
    %262 = arith.addf %260, %261 : vector<8x32xf32>
    %263 = math.tanh %262 : vector<8x32xf32>
    %264 = arith.mulf %259, %263 : vector<8x32xf32>
    %cst_58 = arith.constant dense<0.000000e+00> : vector<8x128xf32>
    %265 = tpu.matmul %243, %1, %cst_58 {dimension_numbers = #tpu.dot_dimension_numbers<[1], [0], [0], [1], [0, 0, 1, 1], [], []>} : vector<8x32xf32>, vector<32x128xf32>, vector<8x128xf32> -> vector<8x128xf32>
    %266 = vector.extract_strided_slice %11 {offsets = [48, 0], sizes = [8, 128], strides = [1, 1]} : vector<64x128xf32> to vector<8x128xf32>
    %267 = arith.addf %266, %265 : vector<8x128xf32>
    %268 = arith.mulf %267, %20 : vector<8x128xf32>
    %269 = math.tanh %268 : vector<8x128xf32>
    %cst_59 = arith.constant 5.000000e-01 : f32
    %270 = vector.broadcast %cst_59 : f32 to vector<8x128xf32>
    %271 = arith.mulf %270, %269 : vector<8x128xf32>
    %cst_60 = arith.constant 5.000000e-01 : f32
    %272 = vector.broadcast %cst_60 : f32 to vector<8x128xf32>
    %273 = arith.addf %271, %272 : vector<8x128xf32>
    %274 = arith.select %17, %269, %273 : vector<8x128xi1>, vector<8x128xf32>
    %275 = vector.extract_strided_slice %274 {offsets = [0, 0], sizes = [8, 32], strides = [1, 1]} : vector<8x128xf32> to vector<8x32xf32>
    %276 = vector.extract_strided_slice %274 {offsets = [0, 32], sizes = [8, 32], strides = [1, 1]} : vector<8x128xf32> to vector<8x32xf32>
    %277 = vector.extract_strided_slice %274 {offsets = [0, 64], sizes = [8, 32], strides = [1, 1]} : vector<8x128xf32> to vector<8x32xf32>
    %278 = vector.extract_strided_slice %274 {offsets = [0, 96], sizes = [8, 32], strides = [1, 1]} : vector<8x128xf32> to vector<8x32xf32>
    %279 = arith.mulf %276, %241 : vector<8x32xf32>
    %280 = arith.mulf %275, %277 : vector<8x32xf32>
    %281 = arith.addf %279, %280 : vector<8x32xf32>
    %282 = math.tanh %281 : vector<8x32xf32>
    %283 = arith.mulf %278, %282 : vector<8x32xf32>
    %cst_61 = arith.constant dense<0.000000e+00> : vector<8x128xf32>
    %284 = tpu.matmul %264, %3, %cst_61 {dimension_numbers = #tpu.dot_dimension_numbers<[1], [0], [0], [1], [0, 0, 1, 1], [], []>} : vector<8x32xf32>, vector<32x128xf32>, vector<8x128xf32> -> vector<8x128xf32>
    %cst_62 = arith.constant dense<0.000000e+00> : vector<8x128xf32>
    %285 = tpu.matmul %283, %2, %cst_62 {dimension_numbers = #tpu.dot_dimension_numbers<[1], [0], [0], [1], [0, 0, 1, 1], [], []>} : vector<8x32xf32>, vector<32x128xf32>, vector<8x128xf32> -> vector<8x128xf32>
    %286 = arith.addf %285, %284 : vector<8x128xf32>
    %287 = vector.broadcast %6 : vector<1x128xf32> to vector<8x128xf32>
    %288 = arith.addf %286, %287 : vector<8x128xf32>
    %289 = arith.mulf %288, %20 : vector<8x128xf32>
    %290 = math.tanh %289 : vector<8x128xf32>
    %cst_63 = arith.constant 5.000000e-01 : f32
    %291 = vector.broadcast %cst_63 : f32 to vector<8x128xf32>
    %292 = arith.mulf %291, %290 : vector<8x128xf32>
    %cst_64 = arith.constant 5.000000e-01 : f32
    %293 = vector.broadcast %cst_64 : f32 to vector<8x128xf32>
    %294 = arith.addf %292, %293 : vector<8x128xf32>
    %295 = arith.select %17, %290, %294 : vector<8x128xi1>, vector<8x128xf32>
    %296 = vector.extract_strided_slice %295 {offsets = [0, 0], sizes = [8, 32], strides = [1, 1]} : vector<8x128xf32> to vector<8x32xf32>
    %297 = vector.extract_strided_slice %295 {offsets = [0, 32], sizes = [8, 32], strides = [1, 1]} : vector<8x128xf32> to vector<8x32xf32>
    %298 = vector.extract_strided_slice %295 {offsets = [0, 64], sizes = [8, 32], strides = [1, 1]} : vector<8x128xf32> to vector<8x32xf32>
    %299 = vector.extract_strided_slice %295 {offsets = [0, 96], sizes = [8, 32], strides = [1, 1]} : vector<8x128xf32> to vector<8x32xf32>
    %300 = arith.mulf %297, %262 : vector<8x32xf32>
    %301 = arith.mulf %296, %298 : vector<8x32xf32>
    %302 = arith.addf %300, %301 : vector<8x32xf32>
    %303 = math.tanh %302 : vector<8x32xf32>
    %304 = arith.mulf %299, %303 : vector<8x32xf32>
    %cst_65 = arith.constant dense<0.000000e+00> : vector<8x128xf32>
    %305 = tpu.matmul %283, %1, %cst_65 {dimension_numbers = #tpu.dot_dimension_numbers<[1], [0], [0], [1], [0, 0, 1, 1], [], []>} : vector<8x32xf32>, vector<32x128xf32>, vector<8x128xf32> -> vector<8x128xf32>
    %306 = vector.extract_strided_slice %11 {offsets = [56, 0], sizes = [8, 128], strides = [1, 1]} : vector<64x128xf32> to vector<8x128xf32>
    %307 = arith.addf %306, %305 : vector<8x128xf32>
    %308 = arith.mulf %307, %20 : vector<8x128xf32>
    %309 = math.tanh %308 : vector<8x128xf32>
    %cst_66 = arith.constant 5.000000e-01 : f32
    %310 = vector.broadcast %cst_66 : f32 to vector<8x128xf32>
    %311 = arith.mulf %310, %309 : vector<8x128xf32>
    %cst_67 = arith.constant 5.000000e-01 : f32
    %312 = vector.broadcast %cst_67 : f32 to vector<8x128xf32>
    %313 = arith.addf %311, %312 : vector<8x128xf32>
    %314 = arith.select %17, %309, %313 : vector<8x128xi1>, vector<8x128xf32>
    %315 = vector.extract_strided_slice %314 {offsets = [0, 0], sizes = [8, 32], strides = [1, 1]} : vector<8x128xf32> to vector<8x32xf32>
    %316 = vector.extract_strided_slice %314 {offsets = [0, 32], sizes = [8, 32], strides = [1, 1]} : vector<8x128xf32> to vector<8x32xf32>
    %317 = vector.extract_strided_slice %314 {offsets = [0, 64], sizes = [8, 32], strides = [1, 1]} : vector<8x128xf32> to vector<8x32xf32>
    %318 = vector.extract_strided_slice %314 {offsets = [0, 96], sizes = [8, 32], strides = [1, 1]} : vector<8x128xf32> to vector<8x32xf32>
    %319 = arith.mulf %316, %281 : vector<8x32xf32>
    %320 = arith.mulf %315, %317 : vector<8x32xf32>
    %321 = arith.addf %319, %320 : vector<8x32xf32>
    %322 = math.tanh %321 : vector<8x32xf32>
    %323 = arith.mulf %318, %322 : vector<8x32xf32>
    %cst_68 = arith.constant dense<0.000000e+00> : vector<8x128xf32>
    %324 = tpu.matmul %304, %3, %cst_68 {dimension_numbers = #tpu.dot_dimension_numbers<[1], [0], [0], [1], [0, 0, 1, 1], [], []>} : vector<8x32xf32>, vector<32x128xf32>, vector<8x128xf32> -> vector<8x128xf32>
    %cst_69 = arith.constant dense<0.000000e+00> : vector<8x128xf32>
    %325 = tpu.matmul %323, %2, %cst_69 {dimension_numbers = #tpu.dot_dimension_numbers<[1], [0], [0], [1], [0, 0, 1, 1], [], []>} : vector<8x32xf32>, vector<32x128xf32>, vector<8x128xf32> -> vector<8x128xf32>
    %326 = arith.addf %325, %324 : vector<8x128xf32>
    %327 = vector.broadcast %6 : vector<1x128xf32> to vector<8x128xf32>
    %328 = arith.addf %326, %327 : vector<8x128xf32>
    %329 = arith.mulf %328, %20 : vector<8x128xf32>
    %330 = math.tanh %329 : vector<8x128xf32>
    %cst_70 = arith.constant 5.000000e-01 : f32
    %331 = vector.broadcast %cst_70 : f32 to vector<8x128xf32>
    %332 = arith.mulf %331, %330 : vector<8x128xf32>
    %cst_71 = arith.constant 5.000000e-01 : f32
    %333 = vector.broadcast %cst_71 : f32 to vector<8x128xf32>
    %334 = arith.addf %332, %333 : vector<8x128xf32>
    %335 = arith.select %17, %330, %334 : vector<8x128xi1>, vector<8x128xf32>
    %336 = vector.extract_strided_slice %335 {offsets = [0, 0], sizes = [8, 32], strides = [1, 1]} : vector<8x128xf32> to vector<8x32xf32>
    %337 = vector.extract_strided_slice %335 {offsets = [0, 32], sizes = [8, 32], strides = [1, 1]} : vector<8x128xf32> to vector<8x32xf32>
    %338 = vector.extract_strided_slice %335 {offsets = [0, 64], sizes = [8, 32], strides = [1, 1]} : vector<8x128xf32> to vector<8x32xf32>
    %339 = vector.extract_strided_slice %335 {offsets = [0, 96], sizes = [8, 32], strides = [1, 1]} : vector<8x128xf32> to vector<8x32xf32>
    %340 = arith.mulf %337, %302 : vector<8x32xf32>
    %341 = arith.mulf %336, %338 : vector<8x32xf32>
    %342 = arith.addf %340, %341 : vector<8x32xf32>
    %343 = math.tanh %342 : vector<8x32xf32>
    %344 = arith.mulf %339, %343 : vector<8x32xf32>
    %345 = vector.extract_strided_slice %344 {offsets = [1, 0], sizes = [1, 32], strides = [1, 1]} : vector<8x32xf32> to vector<1x32xf32>
    %cst_72 = arith.constant dense<0.000000e+00> : vector<1x128xf32>
    %346 = tpu.matmul %345, %4, %cst_72 {dimension_numbers = #tpu.dot_dimension_numbers<[1], [0], [0], [1], [0, 0, 1, 1], [], []>} : vector<1x32xf32>, vector<32x128xf32>, vector<1x128xf32> -> vector<1x128xf32>
    %347 = arith.addf %346, %7 : vector<1x128xf32>
    %348 = tpu.iota {dimensions = array<i32: 1>} : vector<1x128xi32>
    %c5_i32 = arith.constant 5 : i32
    %349 = vector.broadcast %c5_i32 : i32 to vector<1x128xi32>
    %350 = arith.cmpi slt, %348, %349 : vector<1x128xi32>
    %cst_73 = arith.constant 0xFF800000 : f32
    %351 = vector.broadcast %cst_73 : f32 to vector<1x128xf32>
    %352 = arith.select %350, %347, %351 : vector<1x128xi1>, vector<1x128xf32>
    %cst_74 = arith.constant dense<0xFF800000> : vector<1xf32>
    %353 = vector.multi_reduction <maximumf>, %352, %cst_74 [1] : vector<1x128xf32> to vector<1xf32>
    %354 = vector.shape_cast %353 : vector<1xf32> to vector<1x1xf32>
    %355 = vector.broadcast %354 : vector<1x1xf32> to vector<1x128xf32>
    %356 = arith.subf %352, %355 : vector<1x128xf32>
    %357 = math.exp %356 : vector<1x128xf32>
    %cst_75 = arith.constant dense<0.000000e+00> : vector<1xf32>
    %358 = vector.multi_reduction <add>, %357, %cst_75 [1] : vector<1x128xf32> to vector<1xf32>
    %359 = vector.shape_cast %358 : vector<1xf32> to vector<1x1xf32>
    %360 = math.log %359 : vector<1x1xf32>
    %361 = arith.addf %354, %360 : vector<1x1xf32>
    %362 = vector.broadcast %361 : vector<1x1xf32> to vector<1x128xf32>
    %363 = arith.subf %352, %362 : vector<1x128xf32>
    %c0_76 = arith.constant 0 : index
    %c0_77 = arith.constant 0 : index
    %364 = vector.load %arg2[%c0_76, %c0_77] : memref<1x128xf32, #tpu.memory_space<vmem>>, vector<1x128xf32>
    tpu.vector_store %arg2[%c0_76, %c0_77], %363 {strides = array<i32>} : memref<1x128xf32, #tpu.memory_space<vmem>>, vector<1x128xf32>,
    return
  }
}

</mosaic_0001>

<bundles_post_ra>
// kernel: tpu_custom_call.1
= control target key start
LH: loop header
LB: loop body
LE: loop exit
PB: predicated region body
PF: predicated region fallthrough
CT: control target
= control target key end

     0   :  { %7 = vsyncpa [#allocation3], 0  ;;  %s3649_s0 = inlined_call_operand.vmem [shape: f32[64,16], index: 0, kind: input, shape index: {}]   ;;  %s3650_s1 = inlined_call_operand.hbm [shape: f32[168,128], index: 1, kind: input, shape index: {}]   ;;  %s3651_s2 = inlined_call_operand.hbm [shape: f32[1,128], index: 2, kind: output, shape index: {}]  }
   0x1   :  { %8 = vsyncpa [#allocation4], 0  ;;  %s3173_s9 = smov [#allocation2]   ;;  %s3125_s13 = scalar_lea.hbm %s3650_s1, 2688 }
   0x2   :  { %s16_s10 = sshll.u32 %s3173_s9, 4  ;;  %p3126_p0 = scmp.ne.s32.totalorder %s3650_s1, %s3125_s13  ;;  %s17_s10 = int_to_ptr.vmem [resolvable:$true] %s16_s10 }
   0x3   :  { %p3129_p1 = scmp.lt.u32.totalorder %s3125_s13, %s3650_s1 }
   0x5   :  { %p3131_p2 = pnand %p3129_p1, %p3126_p0 }
   0x7   :  { %3134 = shalt.err (!%p3131_p2)
}
   0x8   :  { %s3135_s18 = scalar_lea.vmem %s17_s10, 2688  ;;  %p3140_p4 = scmp.lt.s32.totalorder %s17_s10, %s17_s10 }
   0x9   :  { %p3136_p3 = scmp.ne.s32.totalorder %s17_s10, %s3135_s18  ;;  %p3141_p5 = scmp.lt.s32.totalorder %s3135_s18, %s3135_s18 }
   0xb   :  { %p3142_p6 = por %p3141_p5, %p3140_p4 }
   0xd   :  { %p3143_p7 = pnand %p3142_p6, %p3136_p3 }
   0xf   :  { %3146 = shalt.err (!%p3143_p7)
}
  0x10   :  { %s3174_s19 = smov 128   ;;  %s3175_s20 = smov 8  }
  0x11   :  { %22 = dma.hbm_to_vmem [thread:$0]  %s3650_s1, 2688, %s17_s10, [#allocation3], %s3174_s19, %s3174_s19, %s3175_s20  }
  0x12   :  { %3169 = dma.done.wait [#allocation3], 2688  }
  0x13   :  { %3170 = vsyncadd [#allocation3], 4294964608  ;;  %v3176_v0 = vmov 0.0|0.0   ;;  %vm3177_vm0 = vmmov 0   ;;  %v3178_v1 = vmov 0.0   ;;  %vm59_vm1 = vcmask 130048  }
  0x14   :  { %2897 = vmatprep.subr.bf16.mxu1 %v3176_v0  ;;  %2626 = vmatprep.mubr.msk.f32.mxu1 %vm3177_vm0, %v3178_v1  ;;  %v26_v2 = vld [vmem:[#allocation2] sm:$0xff]  ;;  %v27_v3 = vld [vmem:[#allocation2 + $0x8] sm:$0xff]  ;;  %v28_v4 = vld [vmem:[#allocation2 + $0x10] sm:$0xff]  ;;  %v189_v13 = vlaneseq  ;;  %v3179_v20 = vmov 0.5   ;;  %s3180_s26 = smov 64   ;;  %s3181_s27 = smov 32  }
  0x15   :  { %v2893_v5 = vpack.c.bf16 %v27_v3, %v26_v2  ;;  %v29_v6 = vld [vmem:[#allocation2 + $0x18] sm:$0xff]  ;;  %v47_v7 = vld [vmem:[%s3649_s0] sm:$0xff]  ;;  %v31_v10 = vld [vmem:[#allocation2 + $0x28] sm:$0xff]  ;;  %vm195_vm5 = vcmask 261120   ;;  %vm2404_vm7 = vcmask 1040384  }
  0x16   :  { %v3216_v8 = vpack.c.bf16 %v29_v6, %v28_v4  ;;  %2606 = vmatprep.mubr.msk.f32.mxu0 %vm59_vm1, %v47_v7  ;;  %v30_v9 = vld [vmem:[#allocation2 + $0x20] sm:$0xff]  ;;  %v48_v11 = vld [vmem:[%s3649_s0 + $0x8] sm:$0xff]  ;;  %v3233_v14 = vand.u32 127, %v189_v13  ;;  %v3237_v15 = vld [vmem:[#allocation2 + $0x90] ss:$0 sm:$0xff] }
  0x17   :  { %2894 = vmatprep.subr.bf16.mxu0 %v2893_v5  ;;  %v3223_v12 = vpack.c.bf16 %v31_v10, %v30_v9  ;;  %v32_v35 = vld [vmem:[#allocation2 + $0x30] sm:$0xff]  ;;  %v33_v36 = vld [vmem:[#allocation2 + $0x38] sm:$0xff]  ;;  %v38_v43 = vld [vmem:[#allocation2 + $0x60] sm:$0xff] }
  0x18   :  { %2899 = vmatpush3.bf16.msra.mxu1 %v3216_v8  ;;  %2896 = vmatpush3.bf16.msra.mxu0 %v2893_v5  ;;  %vm191_vm2 = vcmp.ge.s32.totalorder %v3233_v14, 64  ;;  %vm192_vm3 = vcmp.lt.s32.totalorder %v3233_v14, 96  ;;  %v36_v37 = vld [vmem:[#allocation2 + $0x50] sm:$0xff]  ;;  %v3258_v38 = vpack.c.bf16 %v33_v36, %v32_v35  ;;  %v37_v39 = vld [vmem:[#allocation2 + $0x58] sm:$0xff]  ;;  %v39_v44 = vld [vmem:[#allocation2 + $0x68] sm:$0xff]  ;;  %vm2402_vm6 = vcmp.lt.s32.totalorder %v3233_v14, 5 }
  0x19   :  { %2900 = vmatprep.subr.bf16.mxu1 %v3176_v0  ;;  %2909 = vmatprep.subr.bf16.mxu0 %v3176_v0  ;;  %vm3241_vm4 = vmand %vm191_vm2, %vm192_vm3  ;;  %v49_v40 = vld [vmem:[%s3649_s0 + $0x10] sm:$0xff]  ;;  %v50_v41 = vld [vmem:[%s3649_s0 + $0x18] sm:$0xff]  ;;  %v3266_v42 = vpack.c.bf16 %v37_v39, %v36_v37  ;;  %v3275_v48 = vpack.c.bf16 %v39_v44, %v38_v43 }
  0x1a   :  { %v3248_v21 = vsel %vm3241_vm4, 1.0, %v3179_v20  ;;  %v51_v45 = vld [vmem:[%s3649_s0 + $0x20] sm:$0xff]  ;;  %v35_v47 = vld [vmem:[#allocation2 + $0x48] sm:$0xff]  ;;  %v53_v51 = vld [vmem:[%s3649_s0 + $0x30] sm:$0xff] }
  0x1b   :  { %2607 = vmatmul.mubr.msk.f32.vlgmr.msra.gmra.mrb[0].mxu0 %vm59_vm1, %v48_v11  ;;  %v34_v46 = vld [vmem:[#allocation2 + $0x40] sm:$0xff]  ;;  %v52_v50 = vld [vmem:[%s3649_s0 + $0x28] sm:$0xff]  ;;  %v54_v52 = vld [vmem:[%s3649_s0 + $0x38] sm:$0xff]  ;;  %s3182_s0 = smov [#allocation5]  }
  0x1c   :  { %2902 = vmatpush3.bf16.msra.mxu1 %v3223_v12  ;;  %2609 = vmatprep.mubr.msk.f32.mxu0 %vm59_vm1, %v49_v40  ;;  %v3277_v49 = vpack.c.bf16 %v35_v47, %v34_v46  ;;  %v3337_v4 = vld [vmem:[#allocation2 + $0x98] ss:$0 sm:$0xff]  ;;  %s2425_s12 = sshll.u32 %s3182_s0, 4  ;;  %s2426_s12 = int_to_ptr.vmem [resolvable:$true] %s2425_s12 }
  0x1d   :  { %2903 = vmatprep.subr.bf16.mxu1 %v3176_v0  ;;  %2911 = vmatpush3.bf16.msra.mxu0 %v3258_v38  ;;  %s3147_s13 = scalar_lea.vmem %s2426_s12, 16  ;;  %s3151_s14 = scalar_lea.vmem %s2426_s12, 32 }
  0x1e   :  { %2912 = vmatprep.subr.bf16.mxu0 %v3176_v0  ;;  %p3148_p8 = scmp.ne.s32.totalorder %s2426_s12, %s3147_s13  ;;  %p3152_p9 = scmp.lt.s32.totalorder %s2426_s12, %s2426_s12 }
  0x1f   :  { %2627 = vmatmul.mubr.f32.vlgmr.msra.gmra.mrb[0].mxu1 %v3178_v1  ;;  %2610 = vmatmul.mubr.msk.f32.gmra.mrb[2].mxu0 %vm59_vm1, %v50_v41  ;;  %p3153_p10 = scmp.lt.s32.totalorder %s3151_s14, %s3147_s13 }
  0x20   :  { %2637 = vmatprep.mubr.msk.f32.mxu1 %vm3177_vm0, %v3178_v1  ;;  %2905 = vmatpush3.bf16.msra.mxu1 %v3266_v42 }
  0x21   :  { %2906 = vmatprep.subr.bf16.mxu1 %v3176_v0  ;;  %2612 = vmatprep.mubr.msk.f32.mxu0 %vm59_vm1, %v51_v45  ;;  %p3154_p11 = por %p3153_p10, %p3152_p9 }
  0x22   :  { %2914 = vmatpush3.bf16.msra.mxu0 %v3277_v49 }
  0x23   :  { %2613 = vmatmul.mubr.msk.f32.gmra.mrb[4].mxu0 %vm59_vm1, %v52_v50  ;;  %2921 = vmatprep.subr.bf16.mxu0 %v3176_v0  ;;  %p3155_p12 = pnand %p3154_p11, %p3148_p8 }
  0x24   :  { %2908 = vmatpush3.bf16.msra.mxu1 %v3275_v48  ;;  %2615 = vmatprep.mubr.msk.f32.mxu0 %vm59_vm1, %v53_v51 }
  0x25   :  { %2915 = vmatprep.subr.bf16.mxu1 %v3176_v0 }
  0x27   :  { %2638 = vmatmul.mubr.f32.vlgmr.msra.gmra.mrb[2].mxu1 %v3178_v1  ;;  %2616 = vmatmul.mubr.msk.f32.gmra.mrb[6].mxu0 %vm59_vm1, %v54_v52 }
  0x28   :  { %2917 = vmatpush3.bf16.msra.mxu1 %v3216_v8  ;;  %2648 = vmatprep.mubr.msk.f32.mxu0 %vm3177_vm0, %v3178_v1 }
  0x29   :  { %2918 = vmatprep.subr.bf16.mxu1 %v3176_v0  ;;  %2659 = vmatprep.mubr.msk.f32.mxu1 %vm3177_vm0, %v3178_v1 }
  0x2c   :  { %2920 = vmatpush3.bf16.msra.mxu1 %v3223_v12 }
  0x2d   :  { %2927 = vmatprep.subr.bf16.mxu1 %v3176_v0 }
  0xee   :  { %v3239_v16 = vpop.f32.mrb[0].mxu0 }
  0xef   :  { %v150_v17 = vpop.f32.mrb[1].mxu0  ;;  %v156_v3 = vadd.f32 %v3239_v16, %v3237_v15 }
  0xf0   :  { %v151_v19 = vadd.f32 %v3237_v15, %v150_v17 }
  0xf2   :  { %v265_v22 = vpop.f32.mrb[0].mxu1  ;;  %v3309_v56 = vpop.f32.mrb[2].mxu0 }
  0xf3   :  { %v269_v23 = vadd.f32 %v265_v22, %v151_v19  ;;  %v2628_v24 = vpop.f32.mrb[1].mxu1  ;;  %v3311_v57 = vpop.f32.mrb[3].mxu0 }
  0xf5   :  { %v270_v25 = vmul.f32 %v269_v23, %v3248_v21 }
  0xf6   :  { %v3313_v58 = vpop.f32.mrb[4].mxu0 }
  0xf7   :  { %3057 = vtanh.f32 %v270_v25  ;;  %v3315_v59 = vpop.f32.mrb[5].mxu0 }
  0xfa   :  { %v358_v60 = vpop.f32.mrb[2].mxu1  ;;  %v3317_v61 = vpop.f32.mrb[6].mxu0 }
  0xfb   :  { %v2639_v62 = vpop.f32.mrb[3].mxu1  ;;  %v3319_v63 = vpop.f32.mrb[7].mxu0 }
  0xfc   :  { %v161_v62 = vadd.f32 %v3237_v15, %v3311_v57 }
 0x101   :  { %v3058_v26 = vpop.eup %3057 }
 0x102   :  { %v272_v27 = vmul.f32 0.5, %v3058_v26 }
 0x104   :  { %v273_v28 = vadd.f32 0.5, %v272_v27 }
 0x106   :  { %v274_v29 = vsel %vm3241_vm4, %v3058_v26, %v273_v28 }
 0x107   :  { %277 = vrot.lane.b32.xlu0 %v274_v29, %s3180_s26  ;;  %v275_v32 = vmul.f32 0.0, %v274_v29 }
 0x179   :  { %v278_v30 = vpop.permute.xlu0 %277 }
 0x17a   :  { %v280_v31 = vmul.f32 %v278_v30, %v274_v29 }
 0x17c   :  { %282 = vrot.lane.b32.xlu0 %v280_v31, %s3181_s27 }
 0x1ee   :  { %v283_v33 = vpop.permute.xlu0 %282 }
 0x1ef   :  { %v3255_v34 = vadd.f32 %v283_v33, %v275_v32 }
 0x1f1   :  { %3059 = vtanh.f32 %v3255_v34 }
 0x1fb   :  { %v3060_v53 = vpop.eup %3059 }
 0x1fc   :  { %288 = vrot.lane.b32.xlu1 %v3060_v53, %s3180_s26 }
 0x26e   :  { %v289_v54 = vpop.permute.xlu1 %288 }
 0x26f   :  { %v291_v55 = vmul.f32 %v289_v54, %v274_v29 }
 0x271   :  { %363 = vrot.lane.b32.xlu1 %v291_v55, %s3181_s27 }
 0x2e3   :  { %v364_v2 = vpop.permute.xlu1 %363 }
 0x2e4   :  { %2649 = vmatmul.mubr.msk.f32.vlgmr.msra.gmra.mrb[8].mxu0 %vm195_vm5, %v364_v2  ;;  %2660 = vmatmul.mubr.msk.f32.vlgmr.msra.gmra.mrb[4].mxu1 %vm195_vm5, %v364_v2 }
 0x2e5   :  { %2929 = vmatpush3.bf16.msra.mxu1 %v3258_v38  ;;  %2923 = vmatpush3.bf16.msra.mxu0 %v3266_v42 }
 0x2e6   :  { %2930 = vmatprep.subr.bf16.mxu1 %v3176_v0  ;;  %2924 = vmatprep.subr.bf16.mxu0 %v3176_v0 }
 0x2e7   :  { %2681 = vmatprep.mubr.msk.f32.mxu1 %vm3177_vm0, %v3178_v1  ;;  %2670 = vmatprep.mubr.msk.f32.mxu0 %vm3177_vm0, %v3178_v1 }
 0x2e9   :  { %2932 = vmatpush3.bf16.msra.mxu1 %v3277_v49  ;;  %2926 = vmatpush3.bf16.msra.mxu0 %v3275_v48 }
 0x2ea   :  { %2933 = vmatprep.subr.bf16.mxu0 %v3176_v0  ;;  %2939 = vmatprep.subr.bf16.mxu1 %v3176_v0 }
 0x3b7   :  { %v433_v5 = vpop.f32.mrb[8].mxu0  ;;  %v530_v6 = vpop.f32.mrb[4].mxu1 }
 0x3b8   :  { %v434_v7 = vadd.f32 %v433_v5, %v358_v60  ;;  %v534_v9 = vadd.f32 %v530_v6, %v156_v3  ;;  %v2650_v10 = vpop.f32.mrb[9].mxu0  ;;  %v2661_v11 = vpop.f32.mrb[5].mxu1 }
 0x3ba   :  { %v441_v13 = vadd.f32 %v3337_v4, %v434_v7  ;;  %v535_v17 = vmul.f32 %v534_v9, %v3248_v21 }
 0x3bc   :  { %v442_v19 = vmul.f32 %v441_v13, %v3248_v21  ;;  %3061 = vtanh.f32 %v535_v17 }
 0x3be   :  { %3063 = vtanh.f32 %v442_v19 }
 0x3c6   :  { %v3062_v20 = vpop.eup %3061 }
 0x3c7   :  { %v537_v22 = vmul.f32 0.5, %v3062_v20 }
 0x3c8   :  { %v3064_v23 = vpop.eup %3063 }
 0x3c9   :  { %v538_v16 = vadd.f32 0.5, %v537_v22  ;;  %v444_v24 = vmul.f32 0.5, %v3064_v23 }
 0x3cb   :  { %v539_v25 = vsel %vm3241_vm4, %v3062_v20, %v538_v16  ;;  %v445_v26 = vadd.f32 0.5, %v444_v24 }
 0x3cc   :  { %542 = vrot.lane.b32.xlu1 %v539_v25, %s3180_s26  ;;  %v540_v32 = vmul.f32 %v539_v25, %v3255_v34 }
 0x3cd   :  { %v446_v27 = vsel %vm3241_vm4, %v3064_v23, %v445_v26 }
 0x3ce   :  { %449 = vrot.lane.b32.xlu0 %v446_v27, %s3180_s26  ;;  %v447_v36 = vmul.f32 0.0, %v446_v27 }
 0x43e   :  { %v543_v28 = vpop.permute.xlu1 %542 }
 0x43f   :  { %v545_v29 = vmul.f32 %v543_v28, %v539_v25 }
 0x440   :  { %v450_v30 = vpop.permute.xlu0 %449 }
 0x441   :  { %v452_v31 = vmul.f32 %v450_v30, %v446_v27  ;;  %547 = vrot.lane.b32.xlu1 %v545_v29, %s3181_s27 }
 0x443   :  { %454 = vrot.lane.b32.xlu0 %v452_v31, %s3181_s27 }
 0x4b3   :  { %v548_v33 = vpop.permute.xlu1 %547 }
 0x4b4   :  { %v3351_v35 = vadd.f32 %v548_v33, %v540_v32 }
 0x4b5   :  { %v455_v37 = vpop.permute.xlu0 %454 }
 0x4b6   :  { %3065 = vtanh.f32 %v3351_v35  ;;  %v457_v39 = vadd.f32 %v455_v37, %v447_v36 }
 0x4b8   :  { %3067 = vtanh.f32 %v457_v39 }
 0x4c0   :  { %v3066_v40 = vpop.eup %3065 }
 0x4c1   :  { %553 = vrot.lane.b32.xlu1 %v3066_v40, %s3180_s26 }
 0x4c2   :  { %v3068_v41 = vpop.eup %3067 }
 0x4c3   :  { %460 = vrot.lane.b32.xlu0 %v3068_v41, %s3180_s26 }
 0x533   :  { %v554_v43 = vpop.permute.xlu1 %553 }
 0x534   :  { %v556_v44 = vmul.f32 %v554_v43, %v539_v25 }
 0x535   :  { %v461_v45 = vpop.permute.xlu0 %460 }
 0x536   :  { %v463_v46 = vmul.f32 %v461_v45, %v446_v27  ;;  %633 = vrot.lane.b32.xlu1 %v556_v44, %s3181_s27  ;;  %v166_v44 = vadd.f32 %v3309_v56, %v3237_v15 }
 0x538   :  { %558 = vrot.lane.b32.xlu0 %v463_v46, %s3181_s27 }
 0x5a8   :  { %v634_v34 = vpop.permute.xlu1 %633 }
 0x5a9   :  { %2682 = vmatmul.mubr.msk.f32.vlgmr.msra.gmra.mrb[6].mxu1 %vm195_vm5, %v634_v34 }
 0x5aa   :  { %v559_v47 = vpop.permute.xlu0 %558  ;;  %2941 = vmatpush3.bf16.msra.mxu1 %v3266_v42  ;;  %2703 = vmatprep.mubr.msk.f32.mxu1 %vm3177_vm0, %v3178_v1 }
 0x5ab   :  { %2671 = vmatmul.mubr.msk.f32.vlgmr.msra.gmra.mrb[10].mxu0 %vm195_vm5, %v559_v47  ;;  %2942 = vmatprep.subr.bf16.mxu1 %v3176_v0 }
 0x5ac   :  { %2935 = vmatpush3.bf16.msra.mxu0 %v3216_v8  ;;  %2692 = vmatprep.mubr.msk.f32.mxu0 %vm3177_vm0, %v3178_v1 }
 0x5ad   :  { %2936 = vmatprep.subr.bf16.mxu0 %v3176_v0 }
 0x5ae   :  { %2944 = vmatpush3.bf16.msra.mxu1 %v3275_v48 }
 0x5af   :  { %2951 = vmatprep.subr.bf16.mxu1 %v3176_v0 }
 0x5b0   :  { %2938 = vmatpush3.bf16.msra.mxu0 %v3223_v12 }
 0x5b1   :  { %2945 = vmatprep.subr.bf16.mxu0 %v3176_v0 }
 0x5b3   :  { %2693 = vmatmul.mubr.msk.f32.vlgmr.msra.gmra.mrb[12].mxu0 %vm195_vm5, %v634_v34 }
 0x5b4   :  { %2947 = vmatpush3.bf16.msra.mxu0 %v3258_v38  ;;  %2714 = vmatprep.mubr.msk.f32.mxu0 %vm3177_vm0, %v3178_v1 }
 0x5b5   :  { %2948 = vmatprep.subr.bf16.mxu0 %v3176_v0 }
 0x5b8   :  { %2950 = vmatpush3.bf16.msra.mxu0 %v3277_v49 }
 0x5b9   :  { %2957 = vmatprep.subr.bf16.mxu0 %v3176_v0 }
 0x67c   :  { %v703_v50 = vpop.f32.mrb[6].mxu1 }
 0x67d   :  { %v2683_v51 = vpop.f32.mrb[7].mxu1 }
 0x67e   :  { %v628_v52 = vpop.f32.mrb[10].mxu0 }
 0x67f   :  { %v704_v53 = vadd.f32 %v703_v50, %v628_v52  ;;  %v2672_v54 = vpop.f32.mrb[11].mxu0 }
 0x681   :  { %v707_v55 = vadd.f32 %v3337_v4, %v704_v53 }
 0x683   :  { %v708_v60 = vmul.f32 %v707_v55, %v3248_v21 }
 0x685   :  { %3069 = vtanh.f32 %v708_v60 }
 0x686   :  { %v796_v2 = vpop.f32.mrb[12].mxu0 }
 0x687   :  { %v800_v3 = vadd.f32 %v796_v2, %v161_v62  ;;  %v2694_v5 = vpop.f32.mrb[13].mxu0 }
 0x689   :  { %v801_v6 = vmul.f32 %v800_v3, %v3248_v21 }
 0x68b   :  { %3071 = vtanh.f32 %v801_v6 }
 0x68f   :  { %v3070_v7 = vpop.eup %3069 }
 0x690   :  { %v710_v9 = vmul.f32 0.5, %v3070_v7 }
 0x692   :  { %v711_v10 = vadd.f32 0.5, %v710_v9 }
 0x694   :  { %v712_v11 = vsel %vm3241_vm4, %v3070_v7, %v711_v10 }
 0x695   :  { %v3072_v13 = vpop.eup %3071  ;;  %715 = vrot.lane.b32.xlu0 %v712_v11, %s3180_s26  ;;  %v713_v24 = vmul.f32 %v712_v11, %v457_v39 }
 0x696   :  { %v803_v17 = vmul.f32 0.5, %v3072_v13 }
 0x698   :  { %v804_v19 = vadd.f32 0.5, %v803_v17 }
 0x69a   :  { %v805_v57 = vsel %vm3241_vm4, %v3072_v13, %v804_v19 }
 0x69b   :  { %808 = vrot.lane.b32.xlu1 %v805_v57, %s3180_s26  ;;  %v806_v27 = vmul.f32 %v805_v57, %v3351_v35 }
 0x707   :  { %v716_v20 = vpop.permute.xlu0 %715 }
 0x708   :  { %v718_v22 = vmul.f32 %v716_v20, %v712_v11 }
 0x70a   :  { %720 = vrot.lane.b32.xlu0 %v718_v22, %s3181_s27 }
 0x70d   :  { %v809_v23 = vpop.permute.xlu1 %808 }
 0x70e   :  { %v811_v16 = vmul.f32 %v809_v23, %v805_v57 }
 0x710   :  { %813 = vrot.lane.b32.xlu1 %v811_v16, %s3181_s27 }
 0x77c   :  { %v721_v25 = vpop.permute.xlu0 %720 }
 0x77d   :  { %v3392_v26 = vadd.f32 %v721_v25, %v713_v24 }
 0x77f   :  { %3073 = vtanh.f32 %v3392_v26 }
 0x782   :  { %v814_v28 = vpop.permute.xlu1 %813 }
 0x783   :  { %v3396_v29 = vadd.f32 %v814_v28, %v806_v27 }
 0x785   :  { %3075 = vtanh.f32 %v3396_v29 }
 0x789   :  { %v3074_v30 = vpop.eup %3073 }
 0x78a   :  { %726 = vrot.lane.b32.xlu0 %v3074_v30, %s3180_s26 }
 0x78f   :  { %v3076_v31 = vpop.eup %3075 }
 0x790   :  { %819 = vrot.lane.b32.xlu1 %v3076_v31, %s3180_s26 }
 0x7fc   :  { %v727_v32 = vpop.permute.xlu0 %726 }
 0x7fd   :  { %v729_v33 = vmul.f32 %v727_v32, %v712_v11 }
 0x7ff   :  { %824 = vrot.lane.b32.xlu0 %v729_v33, %s3181_s27 }
 0x802   :  { %v820_v36 = vpop.permute.xlu1 %819 }
 0x803   :  { %v822_v37 = vmul.f32 %v820_v36, %v805_v57 }
 0x805   :  { %899 = vrot.lane.b32.xlu1 %v822_v37, %s3181_s27 }
 0x871   :  { %v825_v35 = vpop.permute.xlu0 %824 }
 0x872   :  { %2704 = vmatmul.mubr.msk.f32.vlgmr.msra.gmra.mrb[8].mxu1 %vm195_vm5, %v825_v35  ;;  %v171_v35 = vadd.f32 %v3237_v15, %v3315_v59 }
 0x873   :  { %2953 = vmatpush3.bf16.msra.mxu1 %v3216_v8  ;;  %2725 = vmatprep.mubr.msk.f32.mxu1 %vm3177_vm0, %v3178_v1 }
 0x874   :  { %2954 = vmatprep.subr.bf16.mxu1 %v3176_v0 }
 0x877   :  { %2956 = vmatpush3.bf16.msra.mxu1 %v3223_v12  ;;  %v900_v39 = vpop.permute.xlu1 %899 }
 0x878   :  { %2715 = vmatmul.mubr.msk.f32.vlgmr.msra.gmra.mrb[14].mxu0 %vm195_vm5, %v900_v39  ;;  %2963 = vmatprep.subr.bf16.mxu1 %v3176_v0 }
 0x879   :  { %2959 = vmatpush3.bf16.msra.mxu0 %v3266_v42  ;;  %2736 = vmatprep.mubr.msk.f32.mxu0 %vm3177_vm0, %v3178_v1 }
 0x87a   :  { %2726 = vmatmul.mubr.msk.f32.vlgmr.msra.gmra.mrb[10].mxu1 %vm195_vm5, %v900_v39  ;;  %2960 = vmatprep.subr.bf16.mxu0 %v3176_v0 }
 0x87b   :  { %2965 = vmatpush3.bf16.msra.mxu1 %v3258_v38  ;;  %2747 = vmatprep.mubr.msk.f32.mxu1 %vm3177_vm0, %v3178_v1 }
 0x87c   :  { %2966 = vmatprep.subr.bf16.mxu1 %v3176_v0 }
 0x87d   :  { %2962 = vmatpush3.bf16.msra.mxu0 %v3275_v48 }
 0x87e   :  { %2969 = vmatprep.subr.bf16.mxu0 %v3176_v0 }
 0x87f   :  { %2968 = vmatpush3.bf16.msra.mxu1 %v3277_v49 }
 0x880   :  { %2975 = vmatprep.subr.bf16.mxu1 %v3176_v0 }
 0x945   :  { %v894_v40 = vpop.f32.mrb[8].mxu1 }
 0x946   :  { %v2705_v41 = vpop.f32.mrb[9].mxu1 }
 0x94b   :  { %v969_v43 = vpop.f32.mrb[14].mxu0 }
 0x94c   :  { %v970_v45 = vadd.f32 %v969_v43, %v894_v40  ;;  %v2716_v46 = vpop.f32.mrb[15].mxu0 }
 0x94d   :  { %v1062_v34 = vpop.f32.mrb[10].mxu1 }
 0x94e   :  { %v973_v47 = vadd.f32 %v3337_v4, %v970_v45  ;;  %v1066_v50 = vadd.f32 %v1062_v34, %v166_v44  ;;  %v2727_v51 = vpop.f32.mrb[11].mxu1 }
 0x950   :  { %v974_v52 = vmul.f32 %v973_v47, %v3248_v21  ;;  %v1067_v53 = vmul.f32 %v1066_v50, %v3248_v21 }
 0x952   :  { %3077 = vtanh.f32 %v974_v52 }
 0x953   :  { %3079 = vtanh.f32 %v1067_v53 }
 0x95c   :  { %v3078_v54 = vpop.eup %3077 }
 0x95d   :  { %v3080_v55 = vpop.eup %3079  ;;  %v976_v60 = vmul.f32 0.5, %v3078_v54 }
 0x95e   :  { %v1069_v62 = vmul.f32 0.5, %v3080_v55 }
 0x95f   :  { %v977_v2 = vadd.f32 0.5, %v976_v60 }
 0x960   :  { %v1070_v3 = vadd.f32 0.5, %v1069_v62 }
 0x961   :  { %v978_v56 = vsel %vm3241_vm4, %v3078_v54, %v977_v2 }
 0x962   :  { %v1071_v5 = vsel %vm3241_vm4, %v3080_v55, %v1070_v3  ;;  %981 = vrot.lane.b32.xlu0 %v978_v56, %s3180_s26  ;;  %v979_v11 = vmul.f32 %v978_v56, %v3392_v26 }
 0x963   :  { %1074 = vrot.lane.b32.xlu1 %v1071_v5, %s3180_s26  ;;  %v1072_v13 = vmul.f32 %v1071_v5, %v3396_v29 }
 0x9d4   :  { %v982_v6 = vpop.permute.xlu0 %981 }
 0x9d5   :  { %v1075_v7 = vpop.permute.xlu1 %1074  ;;  %v984_v9 = vmul.f32 %v982_v6, %v978_v56 }
 0x9d6   :  { %v1077_v10 = vmul.f32 %v1075_v7, %v1071_v5 }
 0x9d7   :  { %986 = vrot.lane.b32.xlu0 %v984_v9, %s3181_s27 }
 0x9d8   :  { %1079 = vrot.lane.b32.xlu1 %v1077_v10, %s3181_s27 }
 0xa49   :  { %v987_v17 = vpop.permute.xlu0 %986 }
 0xa4a   :  { %v1080_v19 = vpop.permute.xlu1 %1079  ;;  %v3439_v57 = vadd.f32 %v987_v17, %v979_v11 }
 0xa4b   :  { %v3441_v20 = vadd.f32 %v1080_v19, %v1072_v13 }
 0xa4c   :  { %3081 = vtanh.f32 %v3439_v57 }
 0xa4d   :  { %3083 = vtanh.f32 %v3441_v20 }
 0xa56   :  { %v3082_v22 = vpop.eup %3081 }
 0xa57   :  { %v3084_v23 = vpop.eup %3083  ;;  %992 = vrot.lane.b32.xlu0 %v3082_v22, %s3180_s26 }
 0xa58   :  { %1085 = vrot.lane.b32.xlu1 %v3084_v23, %s3180_s26 }
 0xac9   :  { %v993_v16 = vpop.permute.xlu0 %992 }
 0xaca   :  { %v1086_v24 = vpop.permute.xlu1 %1085  ;;  %v995_v25 = vmul.f32 %v993_v16, %v978_v56 }
 0xacb   :  { %v1088_v26 = vmul.f32 %v1086_v24, %v1071_v5  ;;  %v176_v24 = vadd.f32 %v3313_v58, %v3237_v15 }
 0xacc   :  { %1090 = vrot.lane.b32.xlu0 %v995_v25, %s3181_s27 }
 0xacd   :  { %1165 = vrot.lane.b32.xlu1 %v1088_v26, %s3181_s27 }
 0xb3e   :  { %v1091_v27 = vpop.permute.xlu0 %1090 }
 0xb3f   :  { %v1166_v28 = vpop.permute.xlu1 %1165  ;;  %2737 = vmatmul.mubr.msk.f32.vlgmr.msra.gmra.mrb[16].mxu0 %vm195_vm5, %v1091_v27 }
 0xb40   :  { %2748 = vmatmul.mubr.msk.f32.vlgmr.msra.gmra.mrb[12].mxu1 %vm195_vm5, %v1166_v28  ;;  %2971 = vmatpush3.bf16.msra.mxu0 %v3216_v8 }
 0xb41   :  { %2972 = vmatprep.subr.bf16.mxu0 %v3176_v0  ;;  %2758 = vmatprep.mubr.msk.f32.mxu0 %vm3177_vm0, %v3178_v1 }
 0xb42   :  { %2977 = vmatpush3.bf16.msra.mxu1 %v3266_v42  ;;  %2769 = vmatprep.mubr.msk.f32.mxu1 %vm3177_vm0, %v3178_v1 }
 0xb43   :  { %2978 = vmatprep.subr.bf16.mxu1 %v3176_v0 }
 0xb44   :  { %2974 = vmatpush3.bf16.msra.mxu0 %v3223_v12 }
 0xb45   :  { %2981 = vmatprep.subr.bf16.mxu0 %v3176_v0 }
 0xb46   :  { %2980 = vmatpush3.bf16.msra.mxu1 %v3275_v48 }
 0xb47   :  { %2759 = vmatmul.mubr.msk.f32.vlgmr.msra.gmra.mrb[18].mxu0 %vm195_vm5, %v1166_v28  ;;  %2987 = vmatprep.subr.bf16.mxu1 %v3176_v0 }
 0xb48   :  { %2983 = vmatpush3.bf16.msra.mxu0 %v3258_v38  ;;  %2780 = vmatprep.mubr.msk.f32.mxu0 %vm3177_vm0, %v3178_v1 }
 0xb49   :  { %2984 = vmatprep.subr.bf16.mxu0 %v3176_v0 }
 0xb4c   :  { %2986 = vmatpush3.bf16.msra.mxu0 %v3277_v49 }
 0xb4d   :  { %2993 = vmatprep.subr.bf16.mxu0 %v3176_v0 }
 0xc12   :  { %v1160_v29 = vpop.f32.mrb[16].mxu0 }
 0xc13   :  { %v1235_v30 = vpop.f32.mrb[12].mxu1  ;;  %v2738_v31 = vpop.f32.mrb[17].mxu0 }
 0xc14   :  { %v1236_v32 = vadd.f32 %v1235_v30, %v1160_v29  ;;  %v2749_v33 = vpop.f32.mrb[13].mxu1 }
 0xc16   :  { %v1239_v36 = vadd.f32 %v3337_v4, %v1236_v32 }
 0xc18   :  { %v1240_v37 = vmul.f32 %v1239_v36, %v3248_v21 }
 0xc1a   :  { %3085 = vtanh.f32 %v1240_v37  ;;  %v1328_v39 = vpop.f32.mrb[18].mxu0 }
 0xc1b   :  { %v1332_v40 = vadd.f32 %v1328_v39, %v171_v35  ;;  %v2760_v41 = vpop.f32.mrb[19].mxu0 }
 0xc1d   :  { %v1333_v43 = vmul.f32 %v1332_v40, %v3248_v21 }
 0xc1f   :  { %3087 = vtanh.f32 %v1333_v43 }
 0xc24   :  { %v3086_v44 = vpop.eup %3085 }
 0xc25   :  { %v1242_v45 = vmul.f32 0.5, %v3086_v44 }
 0xc27   :  { %v1243_v46 = vadd.f32 0.5, %v1242_v45 }
 0xc29   :  { %v3088_v34 = vpop.eup %3087  ;;  %v1244_v47 = vsel %vm3241_vm4, %v3086_v44, %v1243_v46 }
 0xc2a   :  { %1247 = vrot.lane.b32.xlu0 %v1244_v47, %s3180_s26  ;;  %v1335_v50 = vmul.f32 0.5, %v3088_v34  ;;  %v1245_v60 = vmul.f32 %v1244_v47, %v3439_v57 }
 0xc2c   :  { %v1336_v51 = vadd.f32 0.5, %v1335_v50 }
 0xc2e   :  { %v1337_v59 = vsel %vm3241_vm4, %v3088_v34, %v1336_v51 }
 0xc2f   :  { %1340 = vrot.lane.b32.xlu1 %v1337_v59, %s3180_s26  ;;  %v1338_v3 = vmul.f32 %v1337_v59, %v3441_v20 }
 0xc9c   :  { %v1248_v52 = vpop.permute.xlu0 %1247 }
 0xc9d   :  { %v1250_v53 = vmul.f32 %v1248_v52, %v1244_v47 }
 0xc9f   :  { %1252 = vrot.lane.b32.xlu0 %v1250_v53, %s3181_s27 }
 0xca1   :  { %v1341_v54 = vpop.permute.xlu1 %1340 }
 0xca2   :  { %v1343_v55 = vmul.f32 %v1341_v54, %v1337_v59 }
 0xca4   :  { %1345 = vrot.lane.b32.xlu1 %v1343_v55, %s3181_s27 }
 0xd11   :  { %v1253_v62 = vpop.permute.xlu0 %1252 }
 0xd12   :  { %v3484_v2 = vadd.f32 %v1253_v62, %v1245_v60 }
 0xd14   :  { %3089 = vtanh.f32 %v3484_v2 }
 0xd16   :  { %v1346_v56 = vpop.permute.xlu1 %1345 }
 0xd17   :  { %v3488_v5 = vadd.f32 %v1346_v56, %v1338_v3 }
 0xd19   :  { %3091 = vtanh.f32 %v3488_v5 }
 0xd1e   :  { %v3090_v6 = vpop.eup %3089 }
 0xd1f   :  { %1258 = vrot.lane.b32.xlu0 %v3090_v6, %s3180_s26 }
 0xd23   :  { %v3092_v7 = vpop.eup %3091 }
 0xd24   :  { %1351 = vrot.lane.b32.xlu1 %v3092_v7, %s3180_s26 }
 0xd91   :  { %v1259_v9 = vpop.permute.xlu0 %1258 }
 0xd92   :  { %v1261_v10 = vmul.f32 %v1259_v9, %v1244_v47 }
 0xd94   :  { %1356 = vrot.lane.b32.xlu0 %v1261_v10, %s3181_s27 }
 0xd96   :  { %v1352_v11 = vpop.permute.xlu1 %1351 }
 0xd97   :  { %v1354_v13 = vmul.f32 %v1352_v11, %v1337_v59  ;;  %v181_v11 = vadd.f32 %v3237_v15, %v3319_v63 }
 0xd99   :  { %1431 = vrot.lane.b32.xlu1 %v1354_v13, %s3181_s27 }
 0xe06   :  { %v1357_v17 = vpop.permute.xlu0 %1356 }
 0xe07   :  { %2770 = vmatmul.mubr.msk.f32.vlgmr.msra.gmra.mrb[14].mxu1 %vm195_vm5, %v1357_v17 }
 0xe08   :  { %2989 = vmatpush3.bf16.msra.mxu1 %v3216_v8  ;;  %2791 = vmatprep.mubr.msk.f32.mxu1 %vm3177_vm0, %v3178_v1 }
 0xe09   :  { %2990 = vmatprep.subr.bf16.mxu1 %v3176_v0 }
 0xe0b   :  { %v1432_v19 = vpop.permute.xlu1 %1431 }
 0xe0c   :  { %2992 = vmatpush3.bf16.msra.mxu1 %v3223_v12  ;;  %2781 = vmatmul.mubr.msk.f32.vlgmr.msra.gmra.mrb[20].mxu0 %vm195_vm5, %v1432_v19 }
 0xe0d   :  { %2995 = vmatpush3.bf16.msra.mxu0 %v3266_v42  ;;  %2999 = vmatprep.subr.bf16.mxu1 %v3176_v0 }
 0xe0e   :  { %2996 = vmatprep.subr.bf16.mxu0 %v3176_v0  ;;  %2802 = vmatprep.mubr.msk.f32.mxu0 %vm3177_vm0, %v3178_v1 }
 0xe0f   :  { %2792 = vmatmul.mubr.msk.f32.vlgmr.msra.gmra.mrb[16].mxu1 %vm195_vm5, %v1432_v19 }
 0xe10   :  { %3001 = vmatpush3.bf16.msra.mxu1 %v3258_v38  ;;  %2813 = vmatprep.mubr.msk.f32.mxu1 %vm3177_vm0, %v3178_v1 }
 0xe11   :  { %2998 = vmatpush3.bf16.msra.mxu0 %v3275_v48  ;;  %3002 = vmatprep.subr.bf16.mxu1 %v3176_v0 }
 0xe12   :  { %3005 = vmatprep.subr.bf16.mxu0 %v3176_v0 }
 0xe14   :  { %3004 = vmatpush3.bf16.msra.mxu1 %v3277_v49 }
 0xe15   :  { %3011 = vmatprep.subr.bf16.mxu1 %v3176_v0 }
 0xeda   :  { %v1426_v57 = vpop.f32.mrb[14].mxu1 }
 0xedb   :  { %v2771_v20 = vpop.f32.mrb[15].mxu1 }
 0xedf   :  { %v1501_v22 = vpop.f32.mrb[20].mxu0 }
 0xee0   :  { %v1502_v23 = vadd.f32 %v1501_v22, %v1426_v57  ;;  %v2782_v16 = vpop.f32.mrb[21].mxu0 }
 0xee2   :  { %v1505_v25 = vadd.f32 %v3337_v4, %v1502_v23  ;;  %v1594_v26 = vpop.f32.mrb[16].mxu1 }
 0xee3   :  { %v1598_v27 = vadd.f32 %v1594_v26, %v176_v24  ;;  %v2793_v28 = vpop.f32.mrb[17].mxu1 }
 0xee4   :  { %v1506_v29 = vmul.f32 %v1505_v25, %v3248_v21 }
 0xee5   :  { %v1599_v30 = vmul.f32 %v1598_v27, %v3248_v21 }
 0xee6   :  { %3093 = vtanh.f32 %v1506_v29 }
 0xee7   :  { %3095 = vtanh.f32 %v1599_v30 }
 0xef0   :  { %v3094_v31 = vpop.eup %3093 }
 0xef1   :  { %v3096_v32 = vpop.eup %3095  ;;  %v1508_v33 = vmul.f32 0.5, %v3094_v31 }
 0xef2   :  { %v1601_v36 = vmul.f32 0.5, %v3096_v32 }
 0xef3   :  { %v1509_v37 = vadd.f32 0.5, %v1508_v33 }
 0xef4   :  { %v1602_v35 = vadd.f32 0.5, %v1601_v36 }
 0xef5   :  { %v1510_v58 = vsel %vm3241_vm4, %v3094_v31, %v1509_v37 }
 0xef6   :  { %v1603_v39 = vsel %vm3241_vm4, %v3096_v32, %v1602_v35  ;;  %1513 = vrot.lane.b32.xlu0 %v1510_v58, %s3180_s26  ;;  %v1511_v45 = vmul.f32 %v1510_v58, %v3484_v2 }
 0xef7   :  { %1606 = vrot.lane.b32.xlu1 %v1603_v39, %s3180_s26  ;;  %v1604_v46 = vmul.f32 %v1603_v39, %v3488_v5 }
 0xf68   :  { %v1514_v40 = vpop.permute.xlu0 %1513 }
 0xf69   :  { %v1607_v41 = vpop.permute.xlu1 %1606  ;;  %v1516_v43 = vmul.f32 %v1514_v40, %v1510_v58 }
 0xf6a   :  { %v1609_v44 = vmul.f32 %v1607_v41, %v1603_v39 }
 0xf6b   :  { %1518 = vrot.lane.b32.xlu0 %v1516_v43, %s3181_s27 }
 0xf6c   :  { %1611 = vrot.lane.b32.xlu1 %v1609_v44, %s3181_s27 }
 0xfdd   :  { %v1519_v34 = vpop.permute.xlu0 %1518 }
 0xfde   :  { %v1612_v47 = vpop.permute.xlu1 %1611  ;;  %v3531_v50 = vadd.f32 %v1519_v34, %v1511_v45 }
 0xfdf   :  { %v3533_v51 = vadd.f32 %v1612_v47, %v1604_v46 }
 0xfe0   :  { %3097 = vtanh.f32 %v3531_v50 }
 0xfe1   :  { %3099 = vtanh.f32 %v3533_v51 }
 0xfea   :  { %v3098_v59 = vpop.eup %3097 }
 0xfeb   :  { %v3100_v52 = vpop.eup %3099  ;;  %1524 = vrot.lane.b32.xlu0 %v3098_v59, %s3180_s26 }
 0xfec   :  { %1617 = vrot.lane.b32.xlu1 %v3100_v52, %s3180_s26 }
0x105d   :  { %v1525_v53 = vpop.permute.xlu0 %1524 }
0x105e   :  { %v1618_v54 = vpop.permute.xlu1 %1617  ;;  %v1527_v55 = vmul.f32 %v1525_v53, %v1510_v58 }
0x105f   :  { %v1620_v60 = vmul.f32 %v1618_v54, %v1603_v39 }
0x1060   :  { %1622 = vrot.lane.b32.xlu0 %v1527_v55, %s3181_s27 }
0x1061   :  { %1697 = vrot.lane.b32.xlu1 %v1620_v60, %s3181_s27 }
0x10d2   :  { %v1623_v62 = vpop.permute.xlu0 %1622 }
0x10d3   :  { %v1698_v2 = vpop.permute.xlu1 %1697  ;;  %2803 = vmatmul.mubr.msk.f32.vlgmr.msra.gmra.mrb[22].mxu0 %vm195_vm5, %v1623_v62 }
0x10d4   :  { %2814 = vmatmul.mubr.msk.f32.vlgmr.msra.gmra.mrb[18].mxu1 %vm195_vm5, %v1698_v2  ;;  %3007 = vmatpush3.bf16.msra.mxu0 %v3216_v8 }
0x10d5   :  { %3008 = vmatprep.subr.bf16.mxu0 %v3176_v0  ;;  %2824 = vmatprep.mubr.msk.f32.mxu0 %vm3177_vm0, %v3178_v1 }
0x10d6   :  { %3013 = vmatpush3.bf16.msra.mxu1 %v3266_v42  ;;  %2835 = vmatprep.mubr.msk.f32.mxu1 %vm3177_vm0, %v3178_v1 }
0x10d7   :  { %3014 = vmatprep.subr.bf16.mxu1 %v3176_v0 }
0x10d8   :  { %3010 = vmatpush3.bf16.msra.mxu0 %v3223_v12 }
0x10d9   :  { %3017 = vmatprep.subr.bf16.mxu0 %v3176_v0 }
0x10da   :  { %3016 = vmatpush3.bf16.msra.mxu1 %v3275_v48 }
0x10db   :  { %2825 = vmatmul.mubr.msk.f32.vlgmr.msra.gmra.mrb[24].mxu0 %vm195_vm5, %v1698_v2  ;;  %3023 = vmatprep.subr.bf16.mxu1 %v3176_v0 }
0x10dc   :  { %3019 = vmatpush3.bf16.msra.mxu0 %v3258_v38  ;;  %2846 = vmatprep.mubr.msk.f32.mxu0 %vm3177_vm0, %v3178_v1 }
0x10dd   :  { %3020 = vmatprep.subr.bf16.mxu0 %v3176_v0 }
0x10e0   :  { %3022 = vmatpush3.bf16.msra.mxu0 %v3277_v49 }
0x10e1   :  { %3029 = vmatprep.subr.bf16.mxu0 %v3176_v0 }
0x11a6   :  { %v1692_v3 = vpop.f32.mrb[22].mxu0 }
0x11a7   :  { %v1767_v56 = vpop.f32.mrb[18].mxu1  ;;  %v2804_v5 = vpop.f32.mrb[23].mxu0 }
0x11a8   :  { %v1768_v6 = vadd.f32 %v1767_v56, %v1692_v3  ;;  %v2815_v7 = vpop.f32.mrb[19].mxu1 }
0x11aa   :  { %v1771_v9 = vadd.f32 %v3337_v4, %v1768_v6 }
0x11ac   :  { %v1772_v10 = vmul.f32 %v1771_v9, %v3248_v21 }
0x11ae   :  { %3101 = vtanh.f32 %v1772_v10  ;;  %v1860_v13 = vpop.f32.mrb[24].mxu0 }
0x11af   :  { %v1864_v17 = vadd.f32 %v1860_v13, %v181_v11  ;;  %v2826_v19 = vpop.f32.mrb[25].mxu0 }
0x11b1   :  { %v1865_v57 = vmul.f32 %v1864_v17, %v3248_v21 }
0x11b3   :  { %3103 = vtanh.f32 %v1865_v57 }
0x11b8   :  { %v3102_v20 = vpop.eup %3101 }
0x11b9   :  { %v1774_v22 = vmul.f32 0.5, %v3102_v20 }
0x11bb   :  { %v1775_v23 = vadd.f32 0.5, %v1774_v22 }
0x11bd   :  { %v3104_v16 = vpop.eup %3103  ;;  %v1776_v24 = vsel %vm3241_vm4, %v3102_v20, %v1775_v23 }
0x11be   :  { %1779 = vrot.lane.b32.xlu0 %v1776_v24, %s3180_s26  ;;  %v1867_v25 = vmul.f32 0.5, %v3104_v16  ;;  %v1777_v31 = vmul.f32 %v1776_v24, %v3531_v50  ;;  %v186_v50 = vadd.f32 %v3317_v61, %v3237_v15 }
0x11c0   :  { %v1868_v26 = vadd.f32 0.5, %v1867_v25 }
0x11c2   :  { %v1869_v63 = vsel %vm3241_vm4, %v3104_v16, %v1868_v26 }
0x11c3   :  { %1872 = vrot.lane.b32.xlu1 %v1869_v63, %s3180_s26  ;;  %v1870_v36 = vmul.f32 %v1869_v63, %v3533_v51 }
0x1230   :  { %v1780_v27 = vpop.permute.xlu0 %1779 }
0x1231   :  { %v1782_v28 = vmul.f32 %v1780_v27, %v1776_v24 }
0x1233   :  { %1784 = vrot.lane.b32.xlu0 %v1782_v28, %s3181_s27 }
0x1235   :  { %v1873_v29 = vpop.permute.xlu1 %1872 }
0x1236   :  { %v1875_v30 = vmul.f32 %v1873_v29, %v1869_v63 }
0x1238   :  { %1877 = vrot.lane.b32.xlu1 %v1875_v30, %s3181_s27 }
0x12a5   :  { %v1785_v32 = vpop.permute.xlu0 %1784 }
0x12a6   :  { %v3576_v33 = vadd.f32 %v1785_v32, %v1777_v31 }
0x12a8   :  { %3105 = vtanh.f32 %v3576_v33 }
0x12aa   :  { %v1878_v37 = vpop.permute.xlu1 %1877 }
0x12ab   :  { %v1880_v35 = vadd.f32 %v1878_v37, %v1870_v36 }
0x12ad   :  { %3107 = vtanh.f32 %v1880_v35 }
0x12b2   :  { %v3106_v58 = vpop.eup %3105 }
0x12b3   :  { %1790 = vrot.lane.b32.xlu0 %v3106_v58, %s3180_s26 }
0x12b7   :  { %v3108_v39 = vpop.eup %3107 }
0x12b8   :  { %1883 = vrot.lane.b32.xlu1 %v3108_v39, %s3180_s26 }
0x1325   :  { %v1791_v40 = vpop.permute.xlu0 %1790 }
0x1326   :  { %v1793_v41 = vmul.f32 %v1791_v40, %v1776_v24 }
0x1328   :  { %1888 = vrot.lane.b32.xlu0 %v1793_v41, %s3181_s27  ;;  %v41_v41 = vld [vmem:[#allocation2 + $0x78] sm:$0xff] }
0x132a   :  { %v1884_v43 = vpop.permute.xlu1 %1883 }
0x132b   :  { %v1886_v44 = vmul.f32 %v1884_v43, %v1869_v63 }
0x132d   :  { %1963 = vrot.lane.b32.xlu1 %v1886_v44, %s3181_s27  ;;  %v43_v44 = vld [vmem:[#allocation2 + $0x88] sm:$0xff] }
0x139a   :  { %v1889_v45 = vpop.permute.xlu0 %1888 }
0x139b   :  { %2836 = vmatmul.mubr.msk.f32.vlgmr.msra.gmra.mrb[20].mxu1 %vm195_vm5, %v1889_v45 }
0x139c   :  { %3025 = vmatpush3.bf16.msra.mxu1 %v3216_v8  ;;  %2857 = vmatprep.mubr.msk.f32.mxu1 %vm3177_vm0, %v3178_v1 }
0x139d   :  { %3026 = vmatprep.subr.bf16.mxu1 %v3176_v0 }
0x139f   :  { %v1964_v46 = vpop.permute.xlu1 %1963 }
0x13a0   :  { %3028 = vmatpush3.bf16.msra.mxu1 %v3223_v12  ;;  %2847 = vmatmul.mubr.msk.f32.vlgmr.msra.gmra.mrb[26].mxu0 %vm195_vm5, %v1964_v46 }
0x13a1   :  { %3035 = vmatprep.subr.bf16.mxu1 %v3176_v0  ;;  %3031 = vmatpush3.bf16.msra.mxu0 %v3266_v42 }
0x13a2   :  { %3032 = vmatprep.subr.bf16.mxu0 %v3176_v0  ;;  %2868 = vmatprep.mubr.msk.f32.mxu0 %vm3177_vm0, %v3178_v1 }
0x13a3   :  { %2858 = vmatmul.mubr.msk.f32.vlgmr.msra.gmra.mrb[22].mxu1 %vm195_vm5, %v1964_v46 }
0x13a4   :  { %3037 = vmatpush3.bf16.msra.mxu1 %v3258_v38  ;;  %2879 = vmatprep.mubr.msk.f32.mxu1 %vm3177_vm0, %v3178_v1 }
0x13a5   :  { %3038 = vmatprep.subr.bf16.mxu1 %v3176_v0  ;;  %3034 = vmatpush3.bf16.msra.mxu0 %v3275_v48 }
0x13a6   :  { %3041 = vmatprep.subr.bf16.mxu0 %v3176_v0 }
0x13a8   :  { %3040 = vmatpush3.bf16.msra.mxu1 %v3277_v49 }
0x146e   :  { %v1958_v8 = vpop.f32.mrb[20].mxu1 }
0x146f   :  { %v2837_v12 = vpop.f32.mrb[21].mxu1 }
0x1473   :  { %v2033_v42 = vpop.f32.mrb[26].mxu0 }
0x1474   :  { %v2034_v34 = vadd.f32 %v2033_v42, %v1958_v8  ;;  %v2848_v47 = vpop.f32.mrb[27].mxu0 }
0x1476   :  { %v2037_v38 = vadd.f32 %v3337_v4, %v2034_v34  ;;  %v2126_v51 = vpop.f32.mrb[22].mxu1  ;;  %v46_v34 = vld [vmem:[#allocation2 + $0xa0] sm:$0x1] }
0x1477   :  { %v2130_v59 = vadd.f32 %v2126_v51, %v186_v50  ;;  %v2859_v52 = vpop.f32.mrb[23].mxu1 }
0x1478   :  { %v2038_v53 = vmul.f32 %v2037_v38, %v3248_v21 }
0x1479   :  { %v2131_v48 = vmul.f32 %v2130_v59, %v3248_v21 }
0x147a   :  { %3109 = vtanh.f32 %v2038_v53 }
0x147b   :  { %3111 = vtanh.f32 %v2131_v48 }
0x1484   :  { %v3110_v49 = vpop.eup %3109 }
0x1485   :  { %v3112_v54 = vpop.eup %3111  ;;  %v2040_v55 = vmul.f32 0.5, %v3110_v49 }
0x1486   :  { %v2133_v60 = vmul.f32 0.5, %v3112_v54 }
0x1487   :  { %v2041_v62 = vadd.f32 0.5, %v2040_v55 }
0x1488   :  { %v2134_v2 = vadd.f32 0.5, %v2133_v60 }
0x1489   :  { %v2042_v15 = vsel %vm3241_vm4, %v3110_v49, %v2041_v62 }
0x148a   :  { %v2135_v61 = vsel %vm3241_vm4, %v3112_v54, %v2134_v2  ;;  %2045 = vrot.lane.b32.xlu0 %v2042_v15, %s3180_s26  ;;  %v2043_v7 = vmul.f32 %v2042_v15, %v3576_v33 }
0x148b   :  { %2138 = vrot.lane.b32.xlu1 %v2135_v61, %s3180_s26  ;;  %v2136_v9 = vmul.f32 %v2135_v61, %v1880_v35 }
0x14fc   :  { %v2046_v3 = vpop.permute.xlu0 %2045 }
0x14fd   :  { %v2139_v56 = vpop.permute.xlu1 %2138  ;;  %v2048_v5 = vmul.f32 %v2046_v3, %v2042_v15 }
0x14fe   :  { %v2141_v6 = vmul.f32 %v2139_v56, %v2135_v61 }
0x14ff   :  { %2050 = vrot.lane.b32.xlu0 %v2048_v5, %s3181_s27 }
0x1500   :  { %2143 = vrot.lane.b32.xlu1 %v2141_v6, %s3181_s27 }
0x1571   :  { %v2051_v10 = vpop.permute.xlu0 %2050 }
0x1572   :  { %v2144_v11 = vpop.permute.xlu1 %2143  ;;  %v2053_v13 = vadd.f32 %v2051_v10, %v2043_v7 }
0x1573   :  { %v2146_v17 = vadd.f32 %v2144_v11, %v2136_v9 }
0x1574   :  { %3113 = vtanh.f32 %v2053_v13 }
0x1575   :  { %3115 = vtanh.f32 %v2146_v17 }
0x157e   :  { %v3114_v19 = vpop.eup %3113 }
0x157f   :  { %v3116_v57 = vpop.eup %3115  ;;  %2056 = vrot.lane.b32.xlu0 %v3114_v19, %s3180_s26 }
0x1580   :  { %2149 = vrot.lane.b32.xlu1 %v3116_v57, %s3180_s26 }
0x15f1   :  { %v2057_v20 = vpop.permute.xlu0 %2056 }
0x15f2   :  { %v2150_v22 = vpop.permute.xlu1 %2149  ;;  %v2059_v23 = vmul.f32 %v2057_v20, %v2042_v15 }
0x15f3   :  { %v2152_v16 = vmul.f32 %v2150_v22, %v2135_v61 }
0x15f4   :  { %2154 = vrot.lane.b32.xlu0 %v2059_v23, %s3181_s27 }
0x15f5   :  { %2229 = vrot.lane.b32.xlu1 %v2152_v16, %s3181_s27 }
0x1666   :  { %v2155_v24 = vpop.permute.xlu0 %2154 }
0x1667   :  { %v2230_v25 = vpop.permute.xlu1 %2229  ;;  %2869 = vmatmul.mubr.msk.f32.vlgmr.msra.gmra.mrb[28].mxu0 %vm195_vm5, %v2155_v24 }
0x1668   :  { %2880 = vmatmul.mubr.msk.f32.vlgmr.msra.gmra.mrb[24].mxu1 %vm195_vm5, %v2230_v25  ;;  %2890 = vmatprep.mubr.msk.f32.mxu0 %vm3177_vm0, %v3178_v1 }
0x173a   :  { %v2224_v26 = vpop.f32.mrb[28].mxu0 }
0x173b   :  { %v2299_v63 = vpop.f32.mrb[24].mxu1  ;;  %v2870_v27 = vpop.f32.mrb[29].mxu0 }
0x173c   :  { %v2300_v28 = vadd.f32 %v2299_v63, %v2224_v26  ;;  %v2881_v29 = vpop.f32.mrb[25].mxu1 }
0x173e   :  { %v2303_v30 = vadd.f32 %v3337_v4, %v2300_v28  ;;  %v40_v4 = vld [vmem:[#allocation2 + $0x70] sm:$0xff] }
0x173f   :  { %v3042_v43 = vpack.c.bf16 %v41_v41, %v40_v4 }
0x1740   :  { %v2304_v31 = vmul.f32 %v2303_v30, %v3248_v21  ;;  %v42_v21 = vld [vmem:[#allocation2 + $0x80] sm:$0xff] }
0x1741   :  { %3043 = vmatpush3.bf16.msra.mxu0 %v3042_v43  ;;  %v3045_v45 = vpack.c.bf16 %v43_v44, %v42_v21 }
0x1742   :  { %3117 = vtanh.f32 %v2304_v31  ;;  %3044 = vmatprep.subr.bf16.mxu0 %v3176_v0 }
0x1745   :  { %3046 = vmatpush3.bf16.msra.mxu0 %v3045_v45 }
0x174c   :  { %v3118_v32 = vpop.eup %3117 }
0x174d   :  { %v2306_v33 = vmul.f32 0.5, %v3118_v32 }
0x174f   :  { %v2307_v36 = vadd.f32 0.5, %v2306_v33 }
0x1751   :  { %v2308_v37 = vsel %vm3241_vm4, %v3118_v32, %v2307_v36 }
0x1752   :  { %2311 = vrot.lane.b32.xlu0 %v2308_v37, %s3180_s26  ;;  %v2309_v58 = vmul.f32 %v2308_v37, %v2053_v13 }
0x17c4   :  { %v2312_v35 = vpop.permute.xlu0 %2311 }
0x17c5   :  { %v2314_v1 = vmul.f32 %v2312_v35, %v2308_v37 }
0x17c7   :  { %2316 = vrot.lane.b32.xlu1 %v2314_v1, %s3181_s27 }
0x1839   :  { %v2317_v39 = vpop.permute.xlu1 %2316 }
0x183a   :  { %v2319_v40 = vadd.f32 %v2317_v39, %v2309_v58 }
0x183c   :  { %3119 = vtanh.f32 %v2319_v40 }
0x1846   :  { %v3120_v18 = vpop.eup %3119 }
0x1847   :  { %2322 = vrot.lane.b32.xlu0 %v3120_v18, %s3180_s26 }
0x18b9   :  { %v2323_v46 = vpop.permute.xlu0 %2322 }
0x18ba   :  { %v2325_v8 = vmul.f32 %v2323_v46, %v2308_v37 }
0x18bc   :  { %v2327_v12 = vrot.slane %v2325_v8, 1 }
0x18be   :  { %2328 = vrot.lane.b32.xlu1 %v2327_v12, %s3181_s27 }
0x1930   :  { %v2329_v42 = vpop.permute.xlu1 %2328 }
0x1931   :  { %2891 = vmatmul.mubr.msk.f32.vlgmr.msra.gmra.mrb[30].mxu0 %vm195_vm5, %v2329_v42 }
0x1a04   :  { %v2398_v47 = vpop.f32.mrb[30].mxu0 }
0x1a05   :  { %v2399_v50 = vadd.f32 %v2398_v47, %v46_v34  ;;  %v2892_v38 = vpop.f32.mrb[31].mxu0 }
0x1a07   :  { %v2403_v0 = vsel %vm2402_vm6, %v2399_v50, -inf }
0x1a08   :  { %v2405_v51 = vsel %vm2404_vm7, %v2403_v0, -inf }
0x1a09   :  { %2406 = vmax.xlane.f32.xlu0 %v2405_v51 }
0x1a96   :  { %v2407_v59 = vpop.xlane.xlu0 %2406 }
0x1a97   :  { %v2408_v52 = vsub.f32 %v2403_v0, %v2407_v59 }
0x1a99   :  { %v2409_v53 = vmul.f32 1.442695, %v2408_v52 }
0x1a9b   :  { %3121 = vpow2.f32 %v2409_v53 }
0x1aa5   :  { %v3122_v48 = vpop.eup %3121 }
0x1aa6   :  { %v2411_v49 = vsel %vm2404_vm7, %v3122_v48, 0.0 }
0x1aa7   :  { %2412 = vadd.xlane.f32.xlu1 %v2411_v49 }
0x1b34   :  { %v2413_v54 = vpop.xlane.xlu1 %2412 }
0x1b35   :  { %3123 = vlog2.f32 %v2413_v54 }
0x1b3f   :  { %v3124_v55 = vpop.eup %3123 }
0x1b40   :  { %v2415_v60 = vmul.f32 0.6931472, %v3124_v55 }
0x1b42   :  { %v2416_v14 = vadd.f32 %v2415_v60, %v2407_v59 }
0x1b44   :  { %v2417_v62 = vsub.f32 %v2403_v0, %v2416_v14 }
0x1b46   :  { %2418 = vst [vmem:[#allocation5] sm:$0x1] %v2417_v62 }
0x1b47   :  { %3158 = shalt.err (!%p3155_p12)
}
0x1b48   :  { %s3159_s17 = scalar_lea.hbm %s3651_s2, 16 }
0x1b49   :  { %p3160_p13 = scmp.ne.s32.totalorder %s3651_s2, %s3159_s17  ;;  %p3163_p0 = scmp.lt.u32.totalorder %s3159_s17, %s3651_s2 }
0x1b4b   :  { %p3165_p1 = pnand %p3163_p0, %p3160_p13 }
0x1b4d   :  { %3168 = shalt.err (!%p3165_p1)
}
0x1b4e   :  { %2428 = dma.vmem_to_hbm [thread:$0]  %s2426_s12, 16, %s3651_s2, [#allocation4]  }
0x1b4f   :  { %3171 = dma.done.wait [#allocation4], 16  }
0x1b50   :  { %3172 = vsyncadd [#allocation4], 4294967280 }
0x1b51   :  { %2432 = vsyncpa [#allocation3], 1 }
0x1b52   :  { %2433 = vsyncpa [#allocation4], 1 }

</bundles_post_ra>
